<compile_context>
chip_gen: v7x
topology: tpu7x:2x2x1
jax: 0.10.0
libtpu: 0.0.40
codegen_flags: <defaults>
</compile_context>

<pallas_src>
import functools

import jax
import jax.numpy as jnp
from jax import lax
from jax.experimental import pallas as pl
from jax.experimental.pallas import tpu as pltpu


# ----------------------------- Pallas kernels ------------------------------ #

def _conv1x1_bn_kernel(x_ref, w_ref, scale_ref, bias_ref, o_ref, *, relu):
    """(tm,Cin)@(Cin,tn) tile of a 1x1 conv + folded-BN scale/bias (+ReLU)."""
    y = jnp.dot(x_ref[...], w_ref[...], preferred_element_type=jnp.float32)
    y = y * scale_ref[...] + bias_ref[...]
    if relu:
        y = jnp.maximum(y, 0.0)
    o_ref[...] = y.astype(o_ref.dtype)


def _conv1x1_bn_add_relu_kernel(x_ref, w_ref, scale_ref, bias_ref, id_ref, o_ref):
    """Fused final 1x1 conv + BN + residual add + ReLU (one HBM pass less)."""
    y = jnp.dot(x_ref[...], w_ref[...], preferred_element_type=jnp.float32)
    y = y * scale_ref[...] + bias_ref[...] + id_ref[...].astype(jnp.float32)
    o_ref[...] = jnp.maximum(y, 0.0).astype(o_ref.dtype)


def _conv3x3_bn_relu_kernel(xs_ref, w_ref, scale_ref, bias_ref, o_ref, acc_ref,
                            *, stride):
    """3x3 conv (any stride, pad=1) + BN + ReLU for one image of the batch.

    xs_ref: (s*s, PHs, PWs, Cin)  space-to-depth parity planes of the padded
            image, xs[ah*s+aw, r, c, :] == x_padded[s*r+ah, s*c+aw, :]
    w_ref:  (9, Cin, Cout)    o_ref: (1, Ho, Wo, Cout)
    acc_ref: (Ho*Wo, Cout) f32 VMEM scratch.

    Each of the 9 taps becomes a *contiguous* window of one parity plane, so
    only the strided output positions are ever computed; the 9 matmuls are
    accumulated in the VMEM scratch.
    """
    s = stride
    _, Ho, Wo, Cout = o_ref.shape
    Cin = xs_ref.shape[-1]
    acc_ref[...] = jnp.zeros_like(acc_ref)
    for kh in range(3):
        qh, ah = kh // s, kh % s
        for kw in range(3):
            qw, aw = kw // s, kw % s
            patch = xs_ref[ah * s + aw, qh:qh + Ho, qw:qw + Wo, :]
            acc_ref[...] += jnp.dot(patch.reshape(Ho * Wo, Cin),
                                    w_ref[kh * 3 + kw],
                                    preferred_element_type=jnp.float32)
    y = acc_ref[...] * scale_ref[...] + bias_ref[...]
    o_ref[...] = jnp.maximum(y, 0.0).reshape(1, Ho, Wo, Cout).astype(o_ref.dtype)


# ------------------------------ thin wrappers ------------------------------ #

def _row_tile(m):
    # full block for small M (no (8,128) constraint when equal to the dim),
    # otherwise 512-row tiles (multiple of 8, good HBM-roofline sized blocks).
    return m if m <= 1024 else 512


def _lane_tile(c):
    # keep the lane (output-channel) tile a multiple of 256 for the v6e/v7x MXU
    # when channels allow; small channel counts use the full dim.
    return c if c <= 512 else 256


def conv1x1_bn(x_nhwc, w, scale, bias, *, relu=False, identity=None):
    """1x1 conv (stride 1) + folded BN (+ReLU, + optional fused residual add).

    w: (Cin, Cout).  If `identity` is given (same spatial shape, Cout channels),
    computes relu(x @ w * scale + bias + identity).
    """
    N, H, W, Cin = x_nhwc.shape
    Cout = w.shape[1]
    M = N * H * W
    tm, tn = _row_tile(M), _lane_tile(Cout)
    grid = (pl.cdiv(M, tm), pl.cdiv(Cout, tn))

    in_specs = [
        pl.BlockSpec((tm, Cin), lambda i, j: (i, 0)),
        pl.BlockSpec((Cin, tn), lambda i, j: (0, j)),
        pl.BlockSpec((1, tn), lambda i, j: (0, j)),
        pl.BlockSpec((1, tn), lambda i, j: (0, j)),
    ]
    args = [x_nhwc.reshape(M, Cin), w,
            scale.reshape(1, Cout), bias.reshape(1, Cout)]
    if identity is None:
        kernel = functools.partial(_conv1x1_bn_kernel, relu=relu)
    else:
        kernel = _conv1x1_bn_add_relu_kernel
        in_specs.append(pl.BlockSpec((tm, tn), lambda i, j: (i, j)))
        args.append(identity.reshape(M, Cout))

    out = pl.pallas_call(
        kernel,
        out_shape=jax.ShapeDtypeStruct((M, Cout), x_nhwc.dtype),
        grid=grid,
        in_specs=in_specs,
        out_specs=pl.BlockSpec((tm, tn), lambda i, j: (i, j)),
        compiler_params=pltpu.CompilerParams(
            dimension_semantics=("parallel", "parallel")),
    )(*args)
    return out.reshape(N, H, W, Cout)


def conv3x3_bn_relu(x_nhwc, w_hwio, scale, bias, *, stride):
    """3x3 conv, padding=1, given stride + folded BN + ReLU.  w: (3,3,Cin,Cout)."""
    N, H, W, Cin = x_nhwc.shape
    Cout = w_hwio.shape[-1]
    s = int(stride)
    Ho, Wo = (H - 1) // s + 1, (W - 1) // s + 1
    # padded spatial extent (halo of 1 on top/left), rounded to a multiple of s.
    PHs, PWs = Ho - 1 + -(-3 // s), Wo - 1 + -(-3 // s)
    PH, PW = s * PHs, s * PWs
    # TODO(synk): this single pad + space-to-depth relayout is an XLA pass over
    # the mid-channel activation; it could be folded into the producing kernel.
    xp = jnp.pad(x_nhwc, ((0, 0),
                          (1, max(PH - 1 - H, 0)),
                          (1, max(PW - 1 - W, 0)),
                          (0, 0)))[:, :PH, :PW, :]
    # xs[n*s*s + ah*s + aw, r, c, :] == xp[n, s*r + ah, s*c + aw, :]
    xs = (xp.reshape(N, PHs, s, PWs, s, Cin)
            .transpose(0, 2, 4, 1, 3, 5)
            .reshape(N * s * s, PHs, PWs, Cin))
    w9 = w_hwio.reshape(9, Cin, Cout)

    return pl.pallas_call(
        functools.partial(_conv3x3_bn_relu_kernel, stride=s),
        out_shape=jax.ShapeDtypeStruct((N, Ho, Wo, Cout), x_nhwc.dtype),
        grid=(N,),
        in_specs=[
            pl.BlockSpec((s * s, PHs, PWs, Cin), lambda n: (n, 0, 0, 0)),
            pl.BlockSpec((9, Cin, Cout), lambda n: (0, 0, 0)),
            pl.BlockSpec((1, Cout), lambda n: (0, 0)),
            pl.BlockSpec((1, Cout), lambda n: (0, 0)),
        ],
        out_specs=pl.BlockSpec((1, Ho, Wo, Cout), lambda n: (n, 0, 0, 0)),
        scratch_shapes=[pltpu.VMEM((Ho * Wo, Cout), jnp.float32)],
        compiler_params=pltpu.CompilerParams(
            dimension_semantics=("parallel",)),
    )(xs, w9, scale.reshape(1, Cout), bias.reshape(1, Cout))


# ------------------------------ block forward ------------------------------ #

def fold_bn(bn, eps=1e-5):
    gamma, beta, mean, var = bn
    scale = gamma / jnp.sqrt(var + eps)
    bias = beta - mean * scale
    return scale, bias


def resnet_block_nchw(x_nchw, p, *, stride, has_downsample):
    """Forward pass matching the PyTorch `block` module (inference-mode BN)."""
    x = jnp.transpose(x_nchw, (0, 2, 3, 1))      # NCHW -> NHWC
    identity = x

    s1, b1 = fold_bn(p["bn1"])
    s2, b2 = fold_bn(p["bn2"])
    s3, b3 = fold_bn(p["bn3"])

    y = conv1x1_bn(x, p["w1"], s1, b1, relu=True)
    y = conv3x3_bn_relu(y, p["w2"], s2, b2, stride=stride)

    if has_downsample:
        sd, bd = fold_bn(p["bnd"])
        # TODO(synk): the strided identity subsample could be expressed through
        # the conv1x1 kernel's index_map instead of an XLA strided slice.
        ident_in = identity[:, ::stride, ::stride, :] if stride != 1 else identity
        identity = conv1x1_bn(ident_in, p["wd"], sd, bd, relu=False)

    # fused: conv3 (1x1) + BN3 + residual add + ReLU in a single kernel.
    out = conv1x1_bn(y, p["w3"], s3, b3, identity=identity)
    return jnp.transpose(out, (0, 3, 1, 2))      # NHWC -> NCHW


# --------------------------- pure-JAX reference ---------------------------- #

def _conv_ref(x, w_hwio, stride, padding):
    return lax.conv_general_dilated(
        x, w_hwio, window_strides=(stride, stride), padding=padding,
        dimension_numbers=("NHWC", "HWIO", "NHWC"))


def resnet_block_ref_nchw(x_nchw, p, *, stride, has_downsample):
    x = jnp.transpose(x_nchw, (0, 2, 3, 1))
    identity = x

    def bn(y, bnp):
        s, b = fold_bn(bnp)
        return y * s + b

    y = _conv_ref(x, p["w1"][None, None], 1, "VALID")
    y = jnp.maximum(bn(y, p["bn1"]), 0.0)
    y = _conv_ref(y, p["w2"], stride, [(1, 1), (1, 1)])
    y = jnp.maximum(bn(y, p["bn2"]), 0.0)
    y = _conv_ref(y, p["w3"][None, None], 1, "VALID")
    y = bn(y, p["bn3"])
    if has_downsample:
        identity = bn(_conv_ref(identity, p["wd"][None, None], stride, "VALID"),
                      p["bnd"])
    out = jnp.maximum(y + identity, 0.0)
    return jnp.transpose(out, (0, 3, 1, 2))


# --------------------------------- params ---------------------------------- #

def init_block_params(key, in_ch, mid_ch, *, has_downsample, expansion=4):
    out_ch = mid_ch * expansion
    ks = jax.random.split(key, 8)

    def w(k, shape):
        return 0.1 * jax.random.normal(k, shape, jnp.float32)

    def bn(k, c):
        k1, k2, k3, k4 = jax.random.split(k, 4)
        gamma = 1.0 + 0.1 * jax.random.normal(k1, (c,), jnp.float32)
        beta = 0.1 * jax.random.normal(k2, (c,), jnp.float32)
        mean = 0.1 * jax.random.normal(k3, (c,), jnp.float32)
        var = 1.0 + 0.1 * jax.random.uniform(k4, (c,), jnp.float32)
        return (gamma, beta, mean, var)

    p = {
        "w1": w(ks[0], (in_ch, mid_ch)),            # conv1 1x1: (Cin, Cmid)
        "bn1": bn(ks[1], mid_ch),
        "w2": w(ks[2], (3, 3, mid_ch, mid_ch)),     # conv2 3x3: HWIO
        "bn2": bn(ks[3], mid_ch),
        "w3": w(ks[4], (mid_ch, out_ch)),           # conv3 1x1: (Cmid, 4*Cmid)
        "bn3": bn(ks[5], out_ch),
    }
    if has_downsample:
        p["wd"] = w(ks[6], (in_ch, out_ch))         # downsample 1x1 (stride s)
        p["bnd"] = bn(ks[7], out_ch)
    return p


# ----------------------------------- main ----------------------------------- #

if __name__ == "__main__":
    key = jax.random.PRNGKey(0)
    k_pa, k_xa, k_pb, k_xb = jax.random.split(key, 4)

    fwd = jax.jit(resnet_block_nchw, static_argnames=("stride", "has_downsample"))

    # Case A: identity_downsample=None, stride=1  (requires in_ch == 4*mid_ch)
    N, mid, H, W = 2, 8, 8, 8
    in_a = 4 * mid
    params_a = init_block_params(k_pa, in_a, mid, has_downsample=False)
    x_a = jax.random.normal(k_xa, (N, in_a, H, W), jnp.float32)      # NCHW
    out_a = jax.block_until_ready(
        fwd(x_a, params_a, stride=1, has_downsample=False))
    ref_a = resnet_block_ref_nchw(x_a, params_a, stride=1, has_downsample=False)
    assert out_a.shape == (N, 4 * mid, H, W)
    assert jnp.allclose(out_a, ref_a, rtol=2e-2, atol=2e-2), \
        float(jnp.abs(out_a - ref_a).max())

    # Case B: identity_downsample = Conv1x1(stride=2) + BN, stride=2
    in_b = 16
    params_b = init_block_params(k_pb, in_b, mid, has_downsample=True)
    x_b = jax.random.normal(k_xb, (N, in_b, H, W), jnp.float32)      # NCHW
    out_b = jax.block_until_ready(
        fwd(x_b, params_b, stride=2, has_downsample=True))
    ref_b = resnet_block_ref_nchw(x_b, params_b, stride=2, has_downsample=True)
    assert out_b.shape == (N, 4 * mid, H // 2, W // 2)
    assert jnp.allclose(out_b, ref_b, rtol=2e-2, atol=2e-2), \
        float(jnp.abs(out_b - ref_b).max())

    print("KERNEL_OK")
</pallas_src>

<mosaic_0001>
module attributes {stable_mosaic.version = 11 : i64} {
  func.func @_conv1x1_bn_kernel(%arg0: i32, %arg1: i32, %arg2: memref<128x32xf32, #tpu.memory_space<vmem>>, %arg3: memref<32x8xf32, #tpu.memory_space<vmem>>, %arg4: memref<1x8xf32, #tpu.memory_space<vmem>>, %arg5: memref<1x8xf32, #tpu.memory_space<vmem>>, %arg6: memref<128x8xf32, #tpu.memory_space<vmem>>) attributes {dimension_semantics = [#tpu.dimension_semantics<parallel>, #tpu.dimension_semantics<parallel>], iteration_bounds = array<i64: 1, 1>, scalar_prefetch = 0 : i64, scratch_operands = 0 : i64, tpu.core_type = #tpu.core_type<tc>, window_params = [{transform_indices = @transform_0, window_bounds = array<i64: 128, 32>}, {transform_indices = @transform_1, window_bounds = array<i64: 32, 8>}, {transform_indices = @transform_2, window_bounds = array<i64: 1, 8>}, {transform_indices = @transform_3, window_bounds = array<i64: 1, 8>}, {transform_indices = @transform_4, window_bounds = array<i64: 128, 8>}]} {
    %c0 = arith.constant 0 : index
    %c0_0 = arith.constant 0 : index
    %0 = vector.load %arg2[%c0, %c0_0] : memref<128x32xf32, #tpu.memory_space<vmem>>, vector<128x32xf32>
    %c0_1 = arith.constant 0 : index
    %c0_2 = arith.constant 0 : index
    %1 = vector.load %arg3[%c0_1, %c0_2] : memref<32x8xf32, #tpu.memory_space<vmem>>, vector<32x8xf32>
    %cst = arith.constant dense<0.000000e+00> : vector<128x8xf32>
    %2 = tpu.matmul %0, %1, %cst {dimension_numbers = #tpu.dot_dimension_numbers<[1], [0], [0], [1], [0, 0, 1, 1], [], []>} : vector<128x32xf32>, vector<32x8xf32>, vector<128x8xf32> -> vector<128x8xf32>
    %c0_3 = arith.constant 0 : index
    %c0_4 = arith.constant 0 : index
    %3 = vector.load %arg4[%c0_3, %c0_4] : memref<1x8xf32, #tpu.memory_space<vmem>>, vector<1x8xf32>
    %4 = vector.broadcast %3 : vector<1x8xf32> to vector<128x8xf32>
    %5 = arith.mulf %2, %4 : vector<128x8xf32>
    %c0_5 = arith.constant 0 : index
    %c0_6 = arith.constant 0 : index
    %6 = vector.load %arg5[%c0_5, %c0_6] : memref<1x8xf32, #tpu.memory_space<vmem>>, vector<1x8xf32>
    %7 = vector.broadcast %6 : vector<1x8xf32> to vector<128x8xf32>
    %8 = arith.addf %5, %7 : vector<128x8xf32>
    %cst_7 = arith.constant 0.000000e+00 : f32
    %9 = vector.broadcast %cst_7 : f32 to vector<128x8xf32>
    %10 = arith.maximumf %8, %9 : vector<128x8xf32>
    %c0_8 = arith.constant 0 : index
    %c0_9 = arith.constant 0 : index
    %11 = vector.load %arg6[%c0_8, %c0_9] : memref<128x8xf32, #tpu.memory_space<vmem>>, vector<128x8xf32>
    tpu.vector_store %arg6[%c0_8, %c0_9], %10 {strides = array<i32>} : memref<128x8xf32, #tpu.memory_space<vmem>>, vector<128x8xf32>,
    return
  }
  func.func @transform_0(%arg0: i32, %arg1: i32) -> (i32, i32) {
    %c0_i32 = arith.constant 0 : i32
    %c0_i32_0 = arith.constant 0 : i32
    return %arg0, %c0_i32 : i32, i32
  }
  func.func @transform_1(%arg0: i32, %arg1: i32) -> (i32, i32) {
    %c0_i32 = arith.constant 0 : i32
    %c0_i32_0 = arith.constant 0 : i32
    return %c0_i32, %arg1 : i32, i32
  }
  func.func @transform_2(%arg0: i32, %arg1: i32) -> (i32, i32) {
    %c0_i32 = arith.constant 0 : i32
    %c0_i32_0 = arith.constant 0 : i32
    return %c0_i32, %arg1 : i32, i32
  }
  func.func @transform_3(%arg0: i32, %arg1: i32) -> (i32, i32) {
    %c0_i32 = arith.constant 0 : i32
    %c0_i32_0 = arith.constant 0 : i32
    return %c0_i32, %arg1 : i32, i32
  }
  func.func @transform_4(%arg0: i32, %arg1: i32) -> (i32, i32) {
    %c0_i32 = arith.constant 0 : i32
    return %arg0, %arg1 : i32, i32
  }
}

module attributes {stable_mosaic.version = 11 : i64} {
  func.func @_conv3x3_bn_relu_kernel(%arg0: i32, %arg1: memref<1x10x10x8xf32, #tpu.memory_space<vmem>>, %arg2: memref<9x8x8xf32, #tpu.memory_space<vmem>>, %arg3: memref<1x8xf32, #tpu.memory_space<vmem>>, %arg4: memref<1x8xf32, #tpu.memory_space<vmem>>, %arg5: memref<1x8x8x8xf32, #tpu.memory_space<vmem>>, %arg6: memref<64x8xf32, #tpu.memory_space<vmem>>) attributes {dimension_semantics = [#tpu.dimension_semantics<parallel>], iteration_bounds = array<i64: 2>, scalar_prefetch = 0 : i64, scratch_operands = 1 : i64, tpu.core_type = #tpu.core_type<tc>, window_params = [{transform_indices = @transform_0, window_bounds = array<i64: 1, 10, 10, 8>}, {pipeline_mode = #tpu.pipeline_mode<synchronous>, transform_indices = @transform_1, window_bounds = array<i64: 9, 8, 8>}, {pipeline_mode = #tpu.pipeline_mode<synchronous>, transform_indices = @transform_2, window_bounds = array<i64: 1, 8>}, {pipeline_mode = #tpu.pipeline_mode<synchronous>, transform_indices = @transform_3, window_bounds = array<i64: 1, 8>}, {transform_indices = @transform_4, window_bounds = array<i64: 1, 8, 8, 8>}]} {
    %cst = arith.constant 0.000000e+00 : f32
    %0 = vector.broadcast %cst : f32 to vector<64x8xf32>
    %c0 = arith.constant 0 : index
    %c0_0 = arith.constant 0 : index
    %1 = vector.load %arg6[%c0, %c0_0] : memref<64x8xf32, #tpu.memory_space<vmem>>, vector<64x8xf32>
    tpu.vector_store %arg6[%c0, %c0_0], %0 {strides = array<i32>} : memref<64x8xf32, #tpu.memory_space<vmem>>, vector<64x8xf32>,
    %c0_1 = arith.constant 0 : index
    %c0_2 = arith.constant 0 : index
    %c0_3 = arith.constant 0 : index
    %c0_4 = arith.constant 0 : index
    %2 = vector.load %arg1[%c0_1, %c0_2, %c0_3, %c0_4] : memref<1x10x10x8xf32, #tpu.memory_space<vmem>>, vector<1x8x8x8xf32>
    %3 = vector.shape_cast %2 : vector<1x8x8x8xf32> to vector<8x8x8xf32>
    %c0_5 = arith.constant 0 : index
    %c0_6 = arith.constant 0 : index
    %4 = vector.load %arg6[%c0_5, %c0_6] : memref<64x8xf32, #tpu.memory_space<vmem>>, vector<64x8xf32>
    %5 = vector.shape_cast %3 : vector<8x8x8xf32> to vector<64x8xf32>
    %c0_7 = arith.constant 0 : index
    %c0_8 = arith.constant 0 : index
    %c0_9 = arith.constant 0 : index
    %6 = vector.load %arg2[%c0_7, %c0_8, %c0_9] : memref<9x8x8xf32, #tpu.memory_space<vmem>>, vector<1x8x8xf32>
    %7 = vector.shape_cast %6 : vector<1x8x8xf32> to vector<8x8xf32>
    %cst_10 = arith.constant dense<0.000000e+00> : vector<64x8xf32>
    %8 = tpu.matmul %5, %7, %cst_10 {dimension_numbers = #tpu.dot_dimension_numbers<[1], [0], [0], [1], [0, 0, 1, 1], [], []>} : vector<64x8xf32>, vector<8x8xf32>, vector<64x8xf32> -> vector<64x8xf32>
    %9 = arith.addf %4, %8 : vector<64x8xf32>
    %c0_11 = arith.constant 0 : index
    %c0_12 = arith.constant 0 : index
    %10 = vector.load %arg6[%c0_11, %c0_12] : memref<64x8xf32, #tpu.memory_space<vmem>>, vector<64x8xf32>
    tpu.vector_store %arg6[%c0_11, %c0_12], %9 {strides = array<i32>} : memref<64x8xf32, #tpu.memory_space<vmem>>, vector<64x8xf32>,
    %c0_13 = arith.constant 0 : index
    %c0_14 = arith.constant 0 : index
    %c1 = arith.constant 1 : index
    %c0_15 = arith.constant 0 : index
    %11 = vector.load %arg1[%c0_13, %c0_14, %c1, %c0_15] : memref<1x10x10x8xf32, #tpu.memory_space<vmem>>, vector<1x8x8x8xf32>
    %12 = vector.shape_cast %11 : vector<1x8x8x8xf32> to vector<8x8x8xf32>
    %c0_16 = arith.constant 0 : index
    %c0_17 = arith.constant 0 : index
    %13 = vector.load %arg6[%c0_16, %c0_17] : memref<64x8xf32, #tpu.memory_space<vmem>>, vector<64x8xf32>
    %14 = vector.shape_cast %12 : vector<8x8x8xf32> to vector<64x8xf32>
    %c1_18 = arith.constant 1 : index
    %c0_19 = arith.constant 0 : index
    %c0_20 = arith.constant 0 : index
    %15 = vector.load %arg2[%c1_18, %c0_19, %c0_20] : memref<9x8x8xf32, #tpu.memory_space<vmem>>, vector<1x8x8xf32>
    %16 = vector.shape_cast %15 : vector<1x8x8xf32> to vector<8x8xf32>
    %cst_21 = arith.constant dense<0.000000e+00> : vector<64x8xf32>
    %17 = tpu.matmul %14, %16, %cst_21 {dimension_numbers = #tpu.dot_dimension_numbers<[1], [0], [0], [1], [0, 0, 1, 1], [], []>} : vector<64x8xf32>, vector<8x8xf32>, vector<64x8xf32> -> vector<64x8xf32>
    %18 = arith.addf %13, %17 : vector<64x8xf32>
    %c0_22 = arith.constant 0 : index
    %c0_23 = arith.constant 0 : index
    %19 = vector.load %arg6[%c0_22, %c0_23] : memref<64x8xf32, #tpu.memory_space<vmem>>, vector<64x8xf32>
    tpu.vector_store %arg6[%c0_22, %c0_23], %18 {strides = array<i32>} : memref<64x8xf32, #tpu.memory_space<vmem>>, vector<64x8xf32>,
    %c0_24 = arith.constant 0 : index
    %c0_25 = arith.constant 0 : index
    %c2 = arith.constant 2 : index
    %c0_26 = arith.constant 0 : index
    %20 = vector.load %arg1[%c0_24, %c0_25, %c2, %c0_26] : memref<1x10x10x8xf32, #tpu.memory_space<vmem>>, vector<1x8x8x8xf32>
    %21 = vector.shape_cast %20 : vector<1x8x8x8xf32> to vector<8x8x8xf32>
    %c0_27 = arith.constant 0 : index
    %c0_28 = arith.constant 0 : index
    %22 = vector.load %arg6[%c0_27, %c0_28] : memref<64x8xf32, #tpu.memory_space<vmem>>, vector<64x8xf32>
    %23 = vector.shape_cast %21 : vector<8x8x8xf32> to vector<64x8xf32>
    %c2_29 = arith.constant 2 : index
    %c0_30 = arith.constant 0 : index
    %c0_31 = arith.constant 0 : index
    %24 = vector.load %arg2[%c2_29, %c0_30, %c0_31] : memref<9x8x8xf32, #tpu.memory_space<vmem>>, vector<1x8x8xf32>
    %25 = vector.shape_cast %24 : vector<1x8x8xf32> to vector<8x8xf32>
    %cst_32 = arith.constant dense<0.000000e+00> : vector<64x8xf32>
    %26 = tpu.matmul %23, %25, %cst_32 {dimension_numbers = #tpu.dot_dimension_numbers<[1], [0], [0], [1], [0, 0, 1, 1], [], []>} : vector<64x8xf32>, vector<8x8xf32>, vector<64x8xf32> -> vector<64x8xf32>
    %27 = arith.addf %22, %26 : vector<64x8xf32>
    %c0_33 = arith.constant 0 : index
    %c0_34 = arith.constant 0 : index
    %28 = vector.load %arg6[%c0_33, %c0_34] : memref<64x8xf32, #tpu.memory_space<vmem>>, vector<64x8xf32>
    tpu.vector_store %arg6[%c0_33, %c0_34], %27 {strides = array<i32>} : memref<64x8xf32, #tpu.memory_space<vmem>>, vector<64x8xf32>,
    %c0_35 = arith.constant 0 : index
    %c1_36 = arith.constant 1 : index
    %c0_37 = arith.constant 0 : index
    %c0_38 = arith.constant 0 : index
    %29 = vector.load %arg1[%c0_35, %c1_36, %c0_37, %c0_38] : memref<1x10x10x8xf32, #tpu.memory_space<vmem>>, vector<1x8x8x8xf32>
    %30 = vector.shape_cast %29 : vector<1x8x8x8xf32> to vector<8x8x8xf32>
    %c0_39 = arith.constant 0 : index
    %c0_40 = arith.constant 0 : index
    %31 = vector.load %arg6[%c0_39, %c0_40] : memref<64x8xf32, #tpu.memory_space<vmem>>, vector<64x8xf32>
    %32 = vector.shape_cast %30 : vector<8x8x8xf32> to vector<64x8xf32>
    %c3 = arith.constant 3 : index
    %c0_41 = arith.constant 0 : index
    %c0_42 = arith.constant 0 : index
    %33 = vector.load %arg2[%c3, %c0_41, %c0_42] : memref<9x8x8xf32, #tpu.memory_space<vmem>>, vector<1x8x8xf32>
    %34 = vector.shape_cast %33 : vector<1x8x8xf32> to vector<8x8xf32>
    %cst_43 = arith.constant dense<0.000000e+00> : vector<64x8xf32>
    %35 = tpu.matmul %32, %34, %cst_43 {dimension_numbers = #tpu.dot_dimension_numbers<[1], [0], [0], [1], [0, 0, 1, 1], [], []>} : vector<64x8xf32>, vector<8x8xf32>, vector<64x8xf32> -> vector<64x8xf32>
    %36 = arith.addf %31, %35 : vector<64x8xf32>
    %c0_44 = arith.constant 0 : index
    %c0_45 = arith.constant 0 : index
    %37 = vector.load %arg6[%c0_44, %c0_45] : memref<64x8xf32, #tpu.memory_space<vmem>>, vector<64x8xf32>
    tpu.vector_store %arg6[%c0_44, %c0_45], %36 {strides = array<i32>} : memref<64x8xf32, #tpu.memory_space<vmem>>, vector<64x8xf32>,
    %c0_46 = arith.constant 0 : index
    %c1_47 = arith.constant 1 : index
    %c1_48 = arith.constant 1 : index
    %c0_49 = arith.constant 0 : index
    %38 = vector.load %arg1[%c0_46, %c1_47, %c1_48, %c0_49] : memref<1x10x10x8xf32, #tpu.memory_space<vmem>>, vector<1x8x8x8xf32>
    %39 = vector.shape_cast %38 : vector<1x8x8x8xf32> to vector<8x8x8xf32>
    %c0_50 = arith.constant 0 : index
    %c0_51 = arith.constant 0 : index
    %40 = vector.load %arg6[%c0_50, %c0_51] : memref<64x8xf32, #tpu.memory_space<vmem>>, vector<64x8xf32>
    %41 = vector.shape_cast %39 : vector<8x8x8xf32> to vector<64x8xf32>
    %c4 = arith.constant 4 : index
    %c0_52 = arith.constant 0 : index
    %c0_53 = arith.constant 0 : index
    %42 = vector.load %arg2[%c4, %c0_52, %c0_53] : memref<9x8x8xf32, #tpu.memory_space<vmem>>, vector<1x8x8xf32>
    %43 = vector.shape_cast %42 : vector<1x8x8xf32> to vector<8x8xf32>
    %cst_54 = arith.constant dense<0.000000e+00> : vector<64x8xf32>
    %44 = tpu.matmul %41, %43, %cst_54 {dimension_numbers = #tpu.dot_dimension_numbers<[1], [0], [0], [1], [0, 0, 1, 1], [], []>} : vector<64x8xf32>, vector<8x8xf32>, vector<64x8xf32> -> vector<64x8xf32>
    %45 = arith.addf %40, %44 : vector<64x8xf32>
    %c0_55 = arith.constant 0 : index
    %c0_56 = arith.constant 0 : index
    %46 = vector.load %arg6[%c0_55, %c0_56] : memref<64x8xf32, #tpu.memory_space<vmem>>, vector<64x8xf32>
    tpu.vector_store %arg6[%c0_55, %c0_56], %45 {strides = array<i32>} : memref<64x8xf32, #tpu.memory_space<vmem>>, vector<64x8xf32>,
    %c0_57 = arith.constant 0 : index
    %c1_58 = arith.constant 1 : index
    %c2_59 = arith.constant 2 : index
    %c0_60 = arith.constant 0 : index
    %47 = vector.load %arg1[%c0_57, %c1_58, %c2_59, %c0_60] : memref<1x10x10x8xf32, #tpu.memory_space<vmem>>, vector<1x8x8x8xf32>
    %48 = vector.shape_cast %47 : vector<1x8x8x8xf32> to vector<8x8x8xf32>
    %c0_61 = arith.constant 0 : index
    %c0_62 = arith.constant 0 : index
    %49 = vector.load %arg6[%c0_61, %c0_62] : memref<64x8xf32, #tpu.memory_space<vmem>>, vector<64x8xf32>
    %50 = vector.shape_cast %48 : vector<8x8x8xf32> to vector<64x8xf32>
    %c5 = arith.constant 5 : index
    %c0_63 = arith.constant 0 : index
    %c0_64 = arith.constant 0 : index
    %51 = vector.load %arg2[%c5, %c0_63, %c0_64] : memref<9x8x8xf32, #tpu.memory_space<vmem>>, vector<1x8x8xf32>
    %52 = vector.shape_cast %51 : vector<1x8x8xf32> to vector<8x8xf32>
    %cst_65 = arith.constant dense<0.000000e+00> : vector<64x8xf32>
    %53 = tpu.matmul %50, %52, %cst_65 {dimension_numbers = #tpu.dot_dimension_numbers<[1], [0], [0], [1], [0, 0, 1, 1], [], []>} : vector<64x8xf32>, vector<8x8xf32>, vector<64x8xf32> -> vector<64x8xf32>
    %54 = arith.addf %49, %53 : vector<64x8xf32>
    %c0_66 = arith.constant 0 : index
    %c0_67 = arith.constant 0 : index
    %55 = vector.load %arg6[%c0_66, %c0_67] : memref<64x8xf32, #tpu.memory_space<vmem>>, vector<64x8xf32>
    tpu.vector_store %arg6[%c0_66, %c0_67], %54 {strides = array<i32>} : memref<64x8xf32, #tpu.memory_space<vmem>>, vector<64x8xf32>,
    %c0_68 = arith.constant 0 : index
    %c2_69 = arith.constant 2 : index
    %c0_70 = arith.constant 0 : index
    %c0_71 = arith.constant 0 : index
    %56 = vector.load %arg1[%c0_68, %c2_69, %c0_70, %c0_71] : memref<1x10x10x8xf32, #tpu.memory_space<vmem>>, vector<1x8x8x8xf32>
    %57 = vector.shape_cast %56 : vector<1x8x8x8xf32> to vector<8x8x8xf32>
    %c0_72 = arith.constant 0 : index
    %c0_73 = arith.constant 0 : index
    %58 = vector.load %arg6[%c0_72, %c0_73] : memref<64x8xf32, #tpu.memory_space<vmem>>, vector<64x8xf32>
    %59 = vector.shape_cast %57 : vector<8x8x8xf32> to vector<64x8xf32>
    %c6 = arith.constant 6 : index
    %c0_74 = arith.constant 0 : index
    %c0_75 = arith.constant 0 : index
    %60 = vector.load %arg2[%c6, %c0_74, %c0_75] : memref<9x8x8xf32, #tpu.memory_space<vmem>>, vector<1x8x8xf32>
    %61 = vector.shape_cast %60 : vector<1x8x8xf32> to vector<8x8xf32>
    %cst_76 = arith.constant dense<0.000000e+00> : vector<64x8xf32>
    %62 = tpu.matmul %59, %61, %cst_76 {dimension_numbers = #tpu.dot_dimension_numbers<[1], [0], [0], [1], [0, 0, 1, 1], [], []>} : vector<64x8xf32>, vector<8x8xf32>, vector<64x8xf32> -> vector<64x8xf32>
    %63 = arith.addf %58, %62 : vector<64x8xf32>
    %c0_77 = arith.constant 0 : index
    %c0_78 = arith.constant 0 : index
    %64 = vector.load %arg6[%c0_77, %c0_78] : memref<64x8xf32, #tpu.memory_space<vmem>>, vector<64x8xf32>
    tpu.vector_store %arg6[%c0_77, %c0_78], %63 {strides = array<i32>} : memref<64x8xf32, #tpu.memory_space<vmem>>, vector<64x8xf32>,
    %c0_79 = arith.constant 0 : index
    %c2_80 = arith.constant 2 : index
    %c1_81 = arith.constant 1 : index
    %c0_82 = arith.constant 0 : index
    %65 = vector.load %arg1[%c0_79, %c2_80, %c1_81, %c0_82] : memref<1x10x10x8xf32, #tpu.memory_space<vmem>>, vector<1x8x8x8xf32>
    %66 = vector.shape_cast %65 : vector<1x8x8x8xf32> to vector<8x8x8xf32>
    %c0_83 = arith.constant 0 : index
    %c0_84 = arith.constant 0 : index
    %67 = vector.load %arg6[%c0_83, %c0_84] : memref<64x8xf32, #tpu.memory_space<vmem>>, vector<64x8xf32>
    %68 = vector.shape_cast %66 : vector<8x8x8xf32> to vector<64x8xf32>
    %c7 = arith.constant 7 : index
    %c0_85 = arith.constant 0 : index
    %c0_86 = arith.constant 0 : index
    %69 = vector.load %arg2[%c7, %c0_85, %c0_86] : memref<9x8x8xf32, #tpu.memory_space<vmem>>, vector<1x8x8xf32>
    %70 = vector.shape_cast %69 : vector<1x8x8xf32> to vector<8x8xf32>
    %cst_87 = arith.constant dense<0.000000e+00> : vector<64x8xf32>
    %71 = tpu.matmul %68, %70, %cst_87 {dimension_numbers = #tpu.dot_dimension_numbers<[1], [0], [0], [1], [0, 0, 1, 1], [], []>} : vector<64x8xf32>, vector<8x8xf32>, vector<64x8xf32> -> vector<64x8xf32>
    %72 = arith.addf %67, %71 : vector<64x8xf32>
    %c0_88 = arith.constant 0 : index
    %c0_89 = arith.constant 0 : index
    %73 = vector.load %arg6[%c0_88, %c0_89] : memref<64x8xf32, #tpu.memory_space<vmem>>, vector<64x8xf32>
    tpu.vector_store %arg6[%c0_88, %c0_89], %72 {strides = array<i32>} : memref<64x8xf32, #tpu.memory_space<vmem>>, vector<64x8xf32>,
    %c0_90 = arith.constant 0 : index
    %c2_91 = arith.constant 2 : index
    %c2_92 = arith.constant 2 : index
    %c0_93 = arith.constant 0 : index
    %74 = vector.load %arg1[%c0_90, %c2_91, %c2_92, %c0_93] : memref<1x10x10x8xf32, #tpu.memory_space<vmem>>, vector<1x8x8x8xf32>
    %75 = vector.shape_cast %74 : vector<1x8x8x8xf32> to vector<8x8x8xf32>
    %c0_94 = arith.constant 0 : index
    %c0_95 = arith.constant 0 : index
    %76 = vector.load %arg6[%c0_94, %c0_95] : memref<64x8xf32, #tpu.memory_space<vmem>>, vector<64x8xf32>
    %77 = vector.shape_cast %75 : vector<8x8x8xf32> to vector<64x8xf32>
    %c8 = arith.constant 8 : index
    %c0_96 = arith.constant 0 : index
    %c0_97 = arith.constant 0 : index
    %78 = vector.load %arg2[%c8, %c0_96, %c0_97] : memref<9x8x8xf32, #tpu.memory_space<vmem>>, vector<1x8x8xf32>
    %79 = vector.shape_cast %78 : vector<1x8x8xf32> to vector<8x8xf32>
    %cst_98 = arith.constant dense<0.000000e+00> : vector<64x8xf32>
    %80 = tpu.matmul %77, %79, %cst_98 {dimension_numbers = #tpu.dot_dimension_numbers<[1], [0], [0], [1], [0, 0, 1, 1], [], []>} : vector<64x8xf32>, vector<8x8xf32>, vector<64x8xf32> -> vector<64x8xf32>
    %81 = arith.addf %76, %80 : vector<64x8xf32>
    %c0_99 = arith.constant 0 : index
    %c0_100 = arith.constant 0 : index
    %82 = vector.load %arg6[%c0_99, %c0_100] : memref<64x8xf32, #tpu.memory_space<vmem>>, vector<64x8xf32>
    tpu.vector_store %arg6[%c0_99, %c0_100], %81 {strides = array<i32>} : memref<64x8xf32, #tpu.memory_space<vmem>>, vector<64x8xf32>,
    %c0_101 = arith.constant 0 : index
    %c0_102 = arith.constant 0 : index
    %83 = vector.load %arg6[%c0_101, %c0_102] : memref<64x8xf32, #tpu.memory_space<vmem>>, vector<64x8xf32>
    %c0_103 = arith.constant 0 : index
    %c0_104 = arith.constant 0 : index
    %84 = vector.load %arg3[%c0_103, %c0_104] : memref<1x8xf32, #tpu.memory_space<vmem>>, vector<1x8xf32>
    %85 = vector.broadcast %84 : vector<1x8xf32> to vector<64x8xf32>
    %86 = arith.mulf %83, %85 : vector<64x8xf32>
    %c0_105 = arith.constant 0 : index
    %c0_106 = arith.constant 0 : index
    %87 = vector.load %arg4[%c0_105, %c0_106] : memref<1x8xf32, #tpu.memory_space<vmem>>, vector<1x8xf32>
    %88 = vector.broadcast %87 : vector<1x8xf32> to vector<64x8xf32>
    %89 = arith.addf %86, %88 : vector<64x8xf32>
    %cst_107 = arith.constant 0.000000e+00 : f32
    %90 = vector.broadcast %cst_107 : f32 to vector<64x8xf32>
    %91 = arith.maximumf %89, %90 : vector<64x8xf32>
    %92 = vector.shape_cast %91 : vector<64x8xf32> to vector<1x8x8x8xf32>
    %c0_108 = arith.constant 0 : index
    %c0_109 = arith.constant 0 : index
    %c0_110 = arith.constant 0 : index
    %c0_111 = arith.constant 0 : index
    %93 = vector.load %arg5[%c0_108, %c0_109, %c0_110, %c0_111] : memref<1x8x8x8xf32, #tpu.memory_space<vmem>>, vector<1x8x8x8xf32>
    tpu.vector_store %arg5[%c0_108, %c0_109, %c0_110, %c0_111], %92 {strides = array<i32>} : memref<1x8x8x8xf32, #tpu.memory_space<vmem>>, vector<1x8x8x8xf32>,
    return
  }
  func.func @transform_0(%arg0: i32) -> (i32, i32, i32, i32) {
    %c0_i32 = arith.constant 0 : i32
    %c0_i32_0 = arith.constant 0 : i32
    %c0_i32_1 = arith.constant 0 : i32
    %c0_i32_2 = arith.constant 0 : i32
    return %arg0, %c0_i32, %c0_i32_0, %c0_i32_1 : i32, i32, i32, i32
  }
  func.func @transform_1(%arg0: i32) -> (i32, i32, i32) {
    %c0_i32 = arith.constant 0 : i32
    %c0_i32_0 = arith.constant 0 : i32
    %c0_i32_1 = arith.constant 0 : i32
    %c0_i32_2 = arith.constant 0 : i32
    return %c0_i32, %c0_i32_0, %c0_i32_1 : i32, i32, i32
  }
  func.func @transform_2(%arg0: i32) -> (i32, i32) {
    %c0_i32 = arith.constant 0 : i32
    %c0_i32_0 = arith.constant 0 : i32
    %c0_i32_1 = arith.constant 0 : i32
    return %c0_i32, %c0_i32_0 : i32, i32
  }
  func.func @transform_3(%arg0: i32) -> (i32, i32) {
    %c0_i32 = arith.constant 0 : i32
    %c0_i32_0 = arith.constant 0 : i32
    %c0_i32_1 = arith.constant 0 : i32
    return %c0_i32, %c0_i32_0 : i32, i32
  }
  func.func @transform_4(%arg0: i32) -> (i32, i32, i32, i32) {
    %c0_i32 = arith.constant 0 : i32
    %c0_i32_0 = arith.constant 0 : i32
    %c0_i32_1 = arith.constant 0 : i32
    %c0_i32_2 = arith.constant 0 : i32
    return %arg0, %c0_i32, %c0_i32_0, %c0_i32_1 : i32, i32, i32, i32
  }
}

module attributes {stable_mosaic.version = 11 : i64} {
  func.func @_conv1x1_bn_add_relu_kernel(%arg0: i32, %arg1: i32, %arg2: memref<128x8xf32, #tpu.memory_space<vmem>>, %arg3: memref<8x32xf32, #tpu.memory_space<vmem>>, %arg4: memref<1x32xf32, #tpu.memory_space<vmem>>, %arg5: memref<1x32xf32, #tpu.memory_space<vmem>>, %arg6: memref<128x32xf32, #tpu.memory_space<vmem>>, %arg7: memref<128x32xf32, #tpu.memory_space<vmem>>) attributes {dimension_semantics = [#tpu.dimension_semantics<parallel>, #tpu.dimension_semantics<parallel>], iteration_bounds = array<i64: 1, 1>, scalar_prefetch = 0 : i64, scratch_operands = 0 : i64, tpu.core_type = #tpu.core_type<tc>, window_params = [{transform_indices = @transform_0, window_bounds = array<i64: 128, 8>}, {transform_indices = @transform_1, window_bounds = array<i64: 8, 32>}, {transform_indices = @transform_2, window_bounds = array<i64: 1, 32>}, {transform_indices = @transform_3, window_bounds = array<i64: 1, 32>}, {transform_indices = @transform_4, window_bounds = array<i64: 128, 32>}, {transform_indices = @transform_5, window_bounds = array<i64: 128, 32>}]} {
    %c0 = arith.constant 0 : index
    %c0_0 = arith.constant 0 : index
    %0 = vector.load %arg2[%c0, %c0_0] : memref<128x8xf32, #tpu.memory_space<vmem>>, vector<128x8xf32>
    %c0_1 = arith.constant 0 : index
    %c0_2 = arith.constant 0 : index
    %1 = vector.load %arg3[%c0_1, %c0_2] : memref<8x32xf32, #tpu.memory_space<vmem>>, vector<8x32xf32>
    %cst = arith.constant dense<0.000000e+00> : vector<128x32xf32>
    %2 = tpu.matmul %0, %1, %cst {dimension_numbers = #tpu.dot_dimension_numbers<[1], [0], [0], [1], [0, 0, 1, 1], [], []>} : vector<128x8xf32>, vector<8x32xf32>, vector<128x32xf32> -> vector<128x32xf32>
    %c0_3 = arith.constant 0 : index
    %c0_4 = arith.constant 0 : index
    %3 = vector.load %arg4[%c0_3, %c0_4] : memref<1x32xf32, #tpu.memory_space<vmem>>, vector<1x32xf32>
    %4 = vector.broadcast %3 : vector<1x32xf32> to vector<128x32xf32>
    %5 = arith.mulf %2, %4 : vector<128x32xf32>
    %c0_5 = arith.constant 0 : index
    %c0_6 = arith.constant 0 : index
    %6 = vector.load %arg5[%c0_5, %c0_6] : memref<1x32xf32, #tpu.memory_space<vmem>>, vector<1x32xf32>
    %7 = vector.broadcast %6 : vector<1x32xf32> to vector<128x32xf32>
    %8 = arith.addf %5, %7 : vector<128x32xf32>
    %c0_7 = arith.constant 0 : index
    %c0_8 = arith.constant 0 : index
    %9 = vector.load %arg6[%c0_7, %c0_8] : memref<128x32xf32, #tpu.memory_space<vmem>>, vector<128x32xf32>
    %10 = arith.addf %8, %9 : vector<128x32xf32>
    %cst_9 = arith.constant 0.000000e+00 : f32
    %11 = vector.broadcast %cst_9 : f32 to vector<128x32xf32>
    %12 = arith.maximumf %10, %11 : vector<128x32xf32>
    %c0_10 = arith.constant 0 : index
    %c0_11 = arith.constant 0 : index
    %13 = vector.load %arg7[%c0_10, %c0_11] : memref<128x32xf32, #tpu.memory_space<vmem>>, vector<128x32xf32>
    tpu.vector_store %arg7[%c0_10, %c0_11], %12 {strides = array<i32>} : memref<128x32xf32, #tpu.memory_space<vmem>>, vector<128x32xf32>,
    return
  }
  func.func @transform_0(%arg0: i32, %arg1: i32) -> (i32, i32) {
    %c0_i32 = arith.constant 0 : i32
    %c0_i32_0 = arith.constant 0 : i32
    return %arg0, %c0_i32 : i32, i32
  }
  func.func @transform_1(%arg0: i32, %arg1: i32) -> (i32, i32) {
    %c0_i32 = arith.constant 0 : i32
    %c0_i32_0 = arith.constant 0 : i32
    return %c0_i32, %arg1 : i32, i32
  }
  func.func @transform_2(%arg0: i32, %arg1: i32) -> (i32, i32) {
    %c0_i32 = arith.constant 0 : i32
    %c0_i32_0 = arith.constant 0 : i32
    return %c0_i32, %arg1 : i32, i32
  }
  func.func @transform_3(%arg0: i32, %arg1: i32) -> (i32, i32) {
    %c0_i32 = arith.constant 0 : i32
    %c0_i32_0 = arith.constant 0 : i32
    return %c0_i32, %arg1 : i32, i32
  }
  func.func @transform_4(%arg0: i32, %arg1: i32) -> (i32, i32) {
    %c0_i32 = arith.constant 0 : i32
    return %arg0, %arg1 : i32, i32
  }
  func.func @transform_5(%arg0: i32, %arg1: i32) -> (i32, i32) {
    %c0_i32 = arith.constant 0 : i32
    return %arg0, %arg1 : i32, i32
  }
}

</mosaic_0001>

<bundles_post_ra>
// kernel: resnet_block_nchw.3
= control target key start
LH: loop header
LB: loop body
LE: loop exit
PB: predicated region body
PF: predicated region fallthrough
CT: control target
= control target key end

     0   :  { %9 = vsyncpa [#allocation3], 0  ;;  %s438_s15 = smov [#allocation2]   ;;  %s612_s0 = inlined_call_operand.hbm [shape: f32[128,32], index: 0, kind: input, shape index: {}]   ;;  %s613_s1 = inlined_call_operand.vmem [shape: f32[32,8], index: 1, kind: input, shape index: {}]   ;;  %s614_s2 = inlined_call_operand.vmem [shape: f32[1,8], index: 2, kind: input, shape index: {}]   ;;  %s615_s3 = inlined_call_operand.vmem [shape: f32[1,8], index: 3, kind: input, shape index: {}]   ;;  %s616_s4 = inlined_call_operand.vmem [shape: f32[128,8], index: 4, kind: output, shape index: {}]  }
   0x1   :  { %s15_s16 = sshll.u32 %s438_s15, 4  ;;  %s414_s19 = scalar_lea.hbm %s612_s0, 2048  ;;  %s16_s16 = int_to_ptr.vmem [resolvable:$true] %s15_s16 }
   0x2   :  { %p415_p0 = scmp.ne.s32.totalorder %s612_s0, %s414_s19  ;;  %p418_p1 = scmp.lt.u32.totalorder %s414_s19, %s612_s0 }
   0x4   :  { %p420_p2 = pnand %p418_p1, %p415_p0 }
   0x6   :  { %423 = shalt.err (!%p420_p2)
}
   0x7   :  { %s424_s24 = scalar_lea.vmem %s16_s16, 2048  ;;  %p429_p4 = scmp.lt.s32.totalorder %s16_s16, %s16_s16 }
   0x8   :  { %p425_p3 = scmp.ne.s32.totalorder %s16_s16, %s424_s24  ;;  %p430_p5 = scmp.lt.s32.totalorder %s424_s24, %s424_s24 }
   0xa   :  { %p431_p6 = por %p430_p5, %p429_p4 }
   0xc   :  { %p432_p7 = pnand %p431_p6, %p425_p3 }
   0xe   :  { %435 = shalt.err (!%p432_p7)
}
   0xf   :  { %s439_s25 = smov 128   ;;  %s440_s26 = smov 8  }
  0x10   :  { %21 = dma.hbm_to_vmem [thread:$0]  %s612_s0, 2048, %s16_s16, [#allocation3], %s439_s25, %s439_s25, %s440_s26  }
  0x11   :  { %436 = dma.done.wait [#allocation3], 2048  }
  0x12   :  { %437 = vsyncadd [#allocation3], 4294965248  ;;  %vm51_vm0 = vcmask 261120   ;;  %v47_v0 = vld [vmem:[%s613_s1] sm:$0xff]  ;;  %v48_v1 = vld [vmem:[%s613_s1 + $0x8] sm:$0xff]  ;;  %vm307_vm1 = vcmask 64512  }
  0x13   :  { %v49_v2 = vld [vmem:[%s613_s1 + $0x10] sm:$0xff]  ;;  %v399_v3 = vpack.c.bf16 %v48_v1, %v47_v0  ;;  %v50_v4 = vld [vmem:[%s613_s1 + $0x18] sm:$0xff]  ;;  %v31_v5 = vld [vmem:[#allocation2] sm:$0xff] }
  0x14   :  { %v39_v6 = vld [vmem:[#allocation2 + $0x40] sm:$0xff]  ;;  %v403_v7 = vpack.c.bf16 %v50_v4, %v49_v2  ;;  %375 = vmatprep.mubr.msk.f32.mxu0 %vm51_vm0, %v31_v5  ;;  %v32_v8 = vld [vmem:[#allocation2 + $0x8] sm:$0xff]  ;;  %v33_v10 = vld [vmem:[#allocation2 + $0x10] sm:$0xff] }
  0x15   :  { %387 = vmatprep.mubr.msk.f32.mxu1 %vm51_vm0, %v39_v6  ;;  %400 = vmatprep.subr.bf16.mxu0 %v399_v3  ;;  %v40_v9 = vld [vmem:[#allocation2 + $0x48] sm:$0xff]  ;;  %v41_v11 = vld [vmem:[#allocation2 + $0x50] sm:$0xff]  ;;  %v34_v12 = vld [vmem:[#allocation2 + $0x18] sm:$0xff] }
  0x16   :  { %407 = vmatprep.subr.bf16.mxu1 %v399_v3  ;;  %402 = vmatpush3.bf16.msra.mxu0 %v399_v3  ;;  %v42_v13 = vld [vmem:[#allocation2 + $0x58] sm:$0xff]  ;;  %v35_v14 = vld [vmem:[#allocation2 + $0x20] sm:$0xff]  ;;  %v36_v16 = vld [vmem:[#allocation2 + $0x28] sm:$0xff] }
  0x17   :  { %409 = vmatpush3.bf16.msra.mxu1 %v399_v3  ;;  %404 = vmatprep.subr.bf16.mxu0 %v403_v7  ;;  %v43_v15 = vld [vmem:[#allocation2 + $0x60] sm:$0xff]  ;;  %v44_v17 = vld [vmem:[#allocation2 + $0x68] sm:$0xff]  ;;  %v37_v18 = vld [vmem:[#allocation2 + $0x30] sm:$0xff] }
  0x18   :  { %408 = vmatprep.subr.bf16.mxu1 %v403_v7  ;;  %v45_v19 = vld [vmem:[#allocation2 + $0x70] sm:$0xff]  ;;  %v38_v20 = vld [vmem:[#allocation2 + $0x38] sm:$0xff]  ;;  %v509_v22 = vld [vmem:[%s614_s2] ss:$0 sm:$0xff] }
  0x19   :  { %v46_v21 = vld [vmem:[#allocation2 + $0x78] sm:$0xff]  ;;  %v514_v24 = vld [vmem:[%s615_s3] ss:$0 sm:$0xff] }
  0x1a   :  { %406 = vmatpush3.bf16.msra.mxu0 %v403_v7 }
  0x1b   :  { %410 = vmatpush3.bf16.msra.mxu1 %v403_v7 }
  0x1d   :  { %376 = vmatmul.mubr.msk.f32.vlgmr.msra.gmra.mrb[0].mxu0 %vm51_vm0, %v32_v8 }
  0x1e   :  { %388 = vmatmul.mubr.msk.f32.vlgmr.msra.gmra.mrb[0].mxu1 %vm51_vm0, %v40_v9  ;;  %378 = vmatprep.mubr.msk.f32.mxu0 %vm51_vm0, %v33_v10 }
  0x1f   :  { %390 = vmatprep.mubr.msk.f32.mxu1 %vm51_vm0, %v41_v11 }
  0x21   :  { %379 = vmatmul.mubr.msk.f32.gmra.mrb[2].mxu0 %vm51_vm0, %v34_v12 }
  0x22   :  { %391 = vmatmul.mubr.msk.f32.gmra.mrb[2].mxu1 %vm51_vm0, %v42_v13  ;;  %381 = vmatprep.mubr.msk.f32.mxu0 %vm51_vm0, %v35_v14 }
  0x23   :  { %393 = vmatprep.mubr.msk.f32.mxu1 %vm51_vm0, %v43_v15 }
  0x25   :  { %382 = vmatmul.mubr.msk.f32.gmra.mrb[4].mxu0 %vm51_vm0, %v36_v16 }
  0x26   :  { %394 = vmatmul.mubr.msk.f32.gmra.mrb[4].mxu1 %vm51_vm0, %v44_v17  ;;  %384 = vmatprep.mubr.msk.f32.mxu0 %vm51_vm0, %v37_v18 }
  0x27   :  { %396 = vmatprep.mubr.msk.f32.mxu1 %vm51_vm0, %v45_v19 }
  0x29   :  { %385 = vmatmul.mubr.msk.f32.gmra.mrb[6].mxu0 %vm51_vm0, %v38_v20 }
  0x2a   :  { %397 = vmatmul.mubr.msk.f32.gmra.mrb[6].mxu1 %vm51_vm0, %v46_v21 }
  0xf0   :  { %v377_v23 = vpop.f32.mrb[0].mxu0 }
  0xf1   :  { %v389_v25 = vpop.f32.mrb[0].mxu1  ;;  %v253_v26 = vmul.f32 %v377_v23, %v509_v22  ;;  %v166_v28 = vpop.f32.mrb[1].mxu0 }
  0xf2   :  { %v261_v27 = vmul.f32 %v389_v25, %v509_v22  ;;  %v206_v29 = vpop.f32.mrb[1].mxu1  ;;  %v252_v30 = vmul.f32 %v509_v22, %v166_v28 }
  0xf3   :  { %v260_v31 = vmul.f32 %v509_v22, %v206_v29  ;;  %v276_v32 = vadd.f32 %v514_v24, %v253_v26 }
  0xf4   :  { %v284_v33 = vadd.f32 %v514_v24, %v261_v27  ;;  %v275_v34 = vadd.f32 %v514_v24, %v252_v30  ;;  %v380_v36 = vpop.f32.mrb[2].mxu0 }
  0xf5   :  { %v283_v35 = vadd.f32 %v514_v24, %v260_v31  ;;  %v392_v37 = vpop.f32.mrb[2].mxu1  ;;  %v292_v38 = vmax.f32 %v276_v32, 0.0  ;;  %v255_v40 = vmul.f32 %v380_v36, %v509_v22  ;;  %v176_v42 = vpop.f32.mrb[3].mxu0 }
  0xf6   :  { %v300_v39 = vmax.f32 %v284_v33, 0.0  ;;  %v263_v41 = vmul.f32 %v392_v37, %v509_v22  ;;  %v216_v43 = vpop.f32.mrb[3].mxu1  ;;  %v291_v44 = vmax.f32 %v275_v34, 0.0  ;;  %v254_v46 = vmul.f32 %v509_v22, %v176_v42 }
  0xf7   :  { %v299_v45 = vmax.f32 %v283_v35, 0.0  ;;  %v262_v47 = vmul.f32 %v509_v22, %v216_v43  ;;  %309 = vst.msk [vmem:[%s616_s4 + $0x8] sm:$0xff] %vm307_vm1, %v292_v38  ;;  %v278_v48 = vadd.f32 %v514_v24, %v255_v40 }
  0xf8   :  { %317 = vst.msk [vmem:[%s616_s4 + $0x48] sm:$0xff] %vm307_vm1, %v300_v39  ;;  %v286_v49 = vadd.f32 %v514_v24, %v263_v41  ;;  %308 = vst.msk [vmem:[%s616_s4] sm:$0xff] %vm307_vm1, %v291_v44  ;;  %v277_v50 = vadd.f32 %v514_v24, %v254_v46  ;;  %v383_v52 = vpop.f32.mrb[4].mxu0 }
  0xf9   :  { %316 = vst.msk [vmem:[%s616_s4 + $0x40] sm:$0xff] %vm307_vm1, %v299_v45  ;;  %v285_v51 = vadd.f32 %v514_v24, %v262_v47  ;;  %v395_v53 = vpop.f32.mrb[4].mxu1  ;;  %v294_v54 = vmax.f32 %v278_v48, 0.0  ;;  %v257_v56 = vmul.f32 %v383_v52, %v509_v22  ;;  %v186_v58 = vpop.f32.mrb[5].mxu0 }
  0xfa   :  { %v302_v55 = vmax.f32 %v286_v49, 0.0  ;;  %v265_v57 = vmul.f32 %v395_v53, %v509_v22  ;;  %v226_v59 = vpop.f32.mrb[5].mxu1  ;;  %v293_v60 = vmax.f32 %v277_v50, 0.0  ;;  %v256_v62 = vmul.f32 %v509_v22, %v186_v58 }
  0xfb   :  { %v301_v61 = vmax.f32 %v285_v51, 0.0  ;;  %v264_v63 = vmul.f32 %v509_v22, %v226_v59  ;;  %311 = vst.msk [vmem:[%s616_s4 + $0x18] sm:$0xff] %vm307_vm1, %v294_v54  ;;  %v280_v0 = vadd.f32 %v514_v24, %v257_v56 }
  0xfc   :  { %319 = vst.msk [vmem:[%s616_s4 + $0x58] sm:$0xff] %vm307_vm1, %v302_v55  ;;  %v288_v1 = vadd.f32 %v514_v24, %v265_v57  ;;  %310 = vst.msk [vmem:[%s616_s4 + $0x10] sm:$0xff] %vm307_vm1, %v293_v60  ;;  %v279_v2 = vadd.f32 %v514_v24, %v256_v62  ;;  %v386_v4 = vpop.f32.mrb[6].mxu0 }
  0xfd   :  { %318 = vst.msk [vmem:[%s616_s4 + $0x50] sm:$0xff] %vm307_vm1, %v301_v61  ;;  %v287_v3 = vadd.f32 %v514_v24, %v264_v63  ;;  %v398_v5 = vpop.f32.mrb[6].mxu1  ;;  %v296_v6 = vmax.f32 %v280_v0, 0.0  ;;  %v259_v8 = vmul.f32 %v386_v4, %v509_v22  ;;  %v196_v10 = vpop.f32.mrb[7].mxu0 }
  0xfe   :  { %v304_v7 = vmax.f32 %v288_v1, 0.0  ;;  %v267_v9 = vmul.f32 %v398_v5, %v509_v22  ;;  %v236_v11 = vpop.f32.mrb[7].mxu1  ;;  %v295_v12 = vmax.f32 %v279_v2, 0.0  ;;  %v258_v14 = vmul.f32 %v509_v22, %v196_v10 }
  0xff   :  { %v303_v13 = vmax.f32 %v287_v3, 0.0  ;;  %v266_v15 = vmul.f32 %v509_v22, %v236_v11  ;;  %313 = vst.msk [vmem:[%s616_s4 + $0x28] sm:$0xff] %vm307_vm1, %v296_v6  ;;  %v282_v16 = vadd.f32 %v514_v24, %v259_v8 }
 0x100   :  { %321 = vst.msk [vmem:[%s616_s4 + $0x68] sm:$0xff] %vm307_vm1, %v304_v7  ;;  %v290_v17 = vadd.f32 %v514_v24, %v267_v9  ;;  %312 = vst.msk [vmem:[%s616_s4 + $0x20] sm:$0xff] %vm307_vm1, %v295_v12  ;;  %v281_v18 = vadd.f32 %v514_v24, %v258_v14 }
 0x101   :  { %320 = vst.msk [vmem:[%s616_s4 + $0x60] sm:$0xff] %vm307_vm1, %v303_v13  ;;  %v289_v19 = vadd.f32 %v514_v24, %v266_v15  ;;  %v298_v20 = vmax.f32 %v282_v16, 0.0 }
 0x102   :  { %v306_v21 = vmax.f32 %v290_v17, 0.0  ;;  %v297_v22 = vmax.f32 %v281_v18, 0.0 }
 0x103   :  { %v305_v23 = vmax.f32 %v289_v19, 0.0  ;;  %315 = vst.msk [vmem:[%s616_s4 + $0x38] sm:$0xff] %vm307_vm1, %v298_v20 }
 0x104   :  { %323 = vst.msk [vmem:[%s616_s4 + $0x78] sm:$0xff] %vm307_vm1, %v306_v21  ;;  %314 = vst.msk [vmem:[%s616_s4 + $0x30] sm:$0xff] %vm307_vm1, %v297_v22 }
 0x105   :  { %322 = vst.msk [vmem:[%s616_s4 + $0x70] sm:$0xff] %vm307_vm1, %v305_v23 }
 0x106   :  { %328 = vsyncpa [#allocation3], 1 }

// kernel: resnet_block_nchw.5
= control target key start
LH: loop header
LB: loop body
LE: loop exit
PB: predicated region body
PF: predicated region fallthrough
CT: control target
= control target key end

     0   :  { %vm38_vm0 = vcmask 64512   ;;  %s667_s0 = inlined_call_operand.vmem [shape: f32[128,8], index: 0, kind: input, shape index: {}]   ;;  %s668_s1 = inlined_call_operand.vmem [shape: f32[8,32], index: 1, kind: input, shape index: {}]   ;;  %s669_s2 = inlined_call_operand.vmem [shape: f32[1,32], index: 2, kind: input, shape index: {}]   ;;  %s670_s3 = inlined_call_operand.vmem [shape: f32[1,32], index: 3, kind: input, shape index: {}]   ;;  %s671_s4 = inlined_call_operand.vmem [shape: f32[128,32], index: 4, kind: input, shape index: {}]   ;;  %s672_s5 = inlined_call_operand.hbm [shape: f32[128,32], index: 5, kind: output, shape index: {}]  }
   0x1   :  { %v37_v0 = vld [vmem:[%s668_s1] sm:$0xff]  ;;  %v22_v3 = vld [vmem:[%s667_s0 + $0x8] sm:$0xff]  ;;  %v23_v5 = vld [vmem:[%s667_s0 + $0x10] sm:$0xff] }
   0x2   :  { %v21_v1 = vld [vmem:[%s667_s0] sm:$0xff]  ;;  %394 = vmatprep.subr.mxu0 %v37_v0  ;;  %420 = vmatprep.subr.mxu1 %v37_v0  ;;  %v30_v4 = vld [vmem:[%s667_s0 + $0x48] sm:$0xff]  ;;  %v31_v6 = vld [vmem:[%s667_s0 + $0x50] sm:$0xff] }
   0x3   :  { %v29_v2 = vld [vmem:[%s667_s0 + $0x40] sm:$0xff]  ;;  %395 = vmatpush3.msra.mxu0 %v37_v0  ;;  %421 = vmatpush3.msra.mxu1 %v37_v0  ;;  %v24_v7 = vld [vmem:[%s667_s0 + $0x18] sm:$0xff] }
   0x4   :  { %396 = vmatprep.mubr.msk.f32.mxu0 %vm38_vm0, %v21_v1  ;;  %408 = vmatprep.mubr.msk.f32.mxu1 %vm38_vm0, %v29_v2  ;;  %v32_v8 = vld [vmem:[%s667_s0 + $0x58] sm:$0xff] }
   0x5   :  { %397 = vmatmul.mubr.msk.f32.vlgmr.msra.gmra.mrb[0].mxu0 %vm38_vm0, %v22_v3  ;;  %409 = vmatmul.mubr.msk.f32.vlgmr.msra.gmra.mrb[0].mxu1 %vm38_vm0, %v30_v4 }
   0x6   :  { %399 = vmatprep.mubr.msk.f32.mxu0 %vm38_vm0, %v23_v5  ;;  %411 = vmatprep.mubr.msk.f32.mxu1 %vm38_vm0, %v31_v6 }
   0x7   :  { %10 = vsyncpa [#allocation3], 0  ;;  %v25_v9 = vld [vmem:[%s667_s0 + $0x20] sm:$0xff]  ;;  %v26_v11 = vld [vmem:[%s667_s0 + $0x28] sm:$0xff]  ;;  %vm326_vm1 = vcmask 261120  }
   0x8   :  { %v33_v10 = vld [vmem:[%s667_s0 + $0x60] sm:$0xff]  ;;  %v34_v12 = vld [vmem:[%s667_s0 + $0x68] sm:$0xff]  ;;  %v27_v13 = vld [vmem:[%s667_s0 + $0x30] sm:$0xff] }
   0x9   :  { %400 = vmatmul.mubr.msk.f32.gmra.mrb[2].mxu0 %vm38_vm0, %v24_v7  ;;  %412 = vmatmul.mubr.msk.f32.gmra.mrb[2].mxu1 %vm38_vm0, %v32_v8  ;;  %v35_v14 = vld [vmem:[%s667_s0 + $0x70] sm:$0xff]  ;;  %v28_v15 = vld [vmem:[%s667_s0 + $0x38] sm:$0xff]  ;;  %v552_v17 = vld [vmem:[%s669_s2] ss:$0 sm:$0xff]  ;;  %s449_s2 = smov [#allocation2]  }
   0xa   :  { %402 = vmatprep.mubr.msk.f32.mxu0 %vm38_vm0, %v25_v9  ;;  %414 = vmatprep.mubr.msk.f32.mxu1 %vm38_vm0, %v33_v10  ;;  %v36_v16 = vld [vmem:[%s667_s0 + $0x78] sm:$0xff]  ;;  %v557_v19 = vld [vmem:[%s670_s3] ss:$0 sm:$0xff]  ;;  %v279_v25 = vld [vmem:[%s671_s4 + $0x8] sm:$0xff]  ;;  %s348_s3 = sshll.u32 %s449_s2, 4  ;;  %s349_s3 = int_to_ptr.vmem [resolvable:$true] %s348_s3 }
   0xb   :  { %v287_v26 = vld [vmem:[%s671_s4 + $0x48] sm:$0xff]  ;;  %v278_v31 = vld [vmem:[%s671_s4] sm:$0xff]  ;;  %v281_v45 = vld [vmem:[%s671_s4 + $0x18] sm:$0xff]  ;;  %p430_p1 = scmp.lt.s32.totalorder %s349_s3, %s349_s3 }
   0xc   :  { %v286_v32 = vld [vmem:[%s671_s4 + $0x40] sm:$0xff]  ;;  %v289_v46 = vld [vmem:[%s671_s4 + $0x58] sm:$0xff]  ;;  %v280_v53 = vld [vmem:[%s671_s4 + $0x10] sm:$0xff] }
   0xd   :  { %403 = vmatmul.mubr.msk.f32.gmra.mrb[4].mxu0 %vm38_vm0, %v26_v11  ;;  %415 = vmatmul.mubr.msk.f32.gmra.mrb[4].mxu1 %vm38_vm0, %v34_v12  ;;  %v288_v54 = vld [vmem:[%s671_s4 + $0x50] sm:$0xff]  ;;  %v283_v5 = vld [vmem:[%s671_s4 + $0x28] sm:$0xff] }
   0xe   :  { %405 = vmatprep.mubr.msk.f32.mxu0 %vm38_vm0, %v27_v13  ;;  %417 = vmatprep.mubr.msk.f32.mxu1 %vm38_vm0, %v35_v14  ;;  %v291_v6 = vld [vmem:[%s671_s4 + $0x68] sm:$0xff]  ;;  %v282_v13 = vld [vmem:[%s671_s4 + $0x20] sm:$0xff] }
   0xf   :  { %v290_v14 = vld [vmem:[%s671_s4 + $0x60] sm:$0xff] }
  0x11   :  { %406 = vmatmul.mubr.msk.f32.gmra.mrb[6].mxu0 %vm38_vm0, %v28_v15  ;;  %418 = vmatmul.mubr.msk.f32.gmra.mrb[6].mxu1 %vm38_vm0, %v36_v16 }
  0xd8   :  { %v398_v18 = vpop.f32.mrb[0].mxu0  ;;  %v410_v20 = vpop.f32.mrb[0].mxu1 }
  0xd9   :  { %v240_v21 = vmul.f32 %v398_v18, %v552_v17  ;;  %v248_v22 = vmul.f32 %v410_v20, %v552_v17  ;;  %v153_v23 = vpop.f32.mrb[1].mxu0  ;;  %v193_v24 = vpop.f32.mrb[1].mxu1 }
  0xda   :  { %v239_v27 = vmul.f32 %v552_v17, %v153_v23  ;;  %v247_v28 = vmul.f32 %v552_v17, %v193_v24 }
  0xdb   :  { %v263_v29 = vadd.f32 %v557_v19, %v240_v21  ;;  %v271_v30 = vadd.f32 %v557_v19, %v248_v22 }
  0xdc   :  { %v262_v33 = vadd.f32 %v557_v19, %v239_v27  ;;  %v270_v34 = vadd.f32 %v557_v19, %v247_v28  ;;  %v401_v35 = vpop.f32.mrb[2].mxu0  ;;  %v413_v36 = vpop.f32.mrb[2].mxu1 }
  0xdd   :  { %v295_v37 = vadd.f32 %v279_v25, %v263_v29  ;;  %v303_v38 = vadd.f32 %v287_v26, %v271_v30  ;;  %v242_v39 = vmul.f32 %v401_v35, %v552_v17  ;;  %v250_v40 = vmul.f32 %v413_v36, %v552_v17  ;;  %v163_v41 = vpop.f32.mrb[3].mxu0  ;;  %v203_v42 = vpop.f32.mrb[3].mxu1 }
  0xde   :  { %v294_v43 = vadd.f32 %v278_v31, %v262_v33  ;;  %v302_v44 = vadd.f32 %v286_v32, %v270_v34  ;;  %v241_v47 = vmul.f32 %v552_v17, %v163_v41  ;;  %v249_v48 = vmul.f32 %v552_v17, %v203_v42  ;;  %v285_v31 = vld [vmem:[%s671_s4 + $0x38] sm:$0xff] }
  0xdf   :  { %v311_v49 = vmax.f32 %v295_v37, 0.0  ;;  %v319_v50 = vmax.f32 %v303_v38, 0.0  ;;  %v265_v51 = vadd.f32 %v557_v19, %v242_v39  ;;  %v273_v52 = vadd.f32 %v557_v19, %v250_v40  ;;  %v293_v32 = vld [vmem:[%s671_s4 + $0x78] sm:$0xff]  ;;  %v284_v39 = vld [vmem:[%s671_s4 + $0x30] sm:$0xff] }
  0xe0   :  { %v310_v55 = vmax.f32 %v294_v43, 0.0  ;;  %v318_v56 = vmax.f32 %v302_v44, 0.0  ;;  %v264_v57 = vadd.f32 %v557_v19, %v241_v47  ;;  %v272_v58 = vadd.f32 %v557_v19, %v249_v48  ;;  %v404_v59 = vpop.f32.mrb[4].mxu0  ;;  %v416_v60 = vpop.f32.mrb[4].mxu1  ;;  %v292_v40 = vld [vmem:[%s671_s4 + $0x70] sm:$0xff]  ;;  %s425_s4 = scalar_lea.vmem %s349_s3, 2048 }
  0xe1   :  { %328 = vst.msk [vmem:[#allocation2 + $0x8] sm:$0xff] %vm326_vm1, %v311_v49  ;;  %336 = vst.msk [vmem:[#allocation2 + $0x48] sm:$0xff] %vm326_vm1, %v319_v50  ;;  %v297_v61 = vadd.f32 %v281_v45, %v265_v51  ;;  %v305_v62 = vadd.f32 %v289_v46, %v273_v52  ;;  %v244_v63 = vmul.f32 %v404_v59, %v552_v17  ;;  %v173_v1 = vpop.f32.mrb[5].mxu0  ;;  %v213_v2 = vpop.f32.mrb[5].mxu1  ;;  %p426_p0 = scmp.ne.s32.totalorder %s349_s3, %s425_s4  ;;  %p431_p2 = scmp.lt.s32.totalorder %s425_s4, %s425_s4 }
  0xe2   :  { %v252_v0 = vmul.f32 %v416_v60, %v552_v17  ;;  %327 = vst.msk [vmem:[#allocation2] sm:$0xff] %vm326_vm1, %v310_v55  ;;  %335 = vst.msk [vmem:[#allocation2 + $0x40] sm:$0xff] %vm326_vm1, %v318_v56  ;;  %v296_v3 = vadd.f32 %v280_v53, %v264_v57  ;;  %v304_v4 = vadd.f32 %v288_v54, %v272_v58 }
  0xe3   :  { %v243_v7 = vmul.f32 %v552_v17, %v173_v1  ;;  %v251_v8 = vmul.f32 %v552_v17, %v213_v2  ;;  %v313_v9 = vmax.f32 %v297_v61, 0.0  ;;  %v321_v10 = vmax.f32 %v305_v62, 0.0  ;;  %p432_p3 = por %p431_p2, %p430_p1 }
  0xe4   :  { %v267_v11 = vadd.f32 %v557_v19, %v244_v63  ;;  %v275_v12 = vadd.f32 %v557_v19, %v252_v0  ;;  %v312_v15 = vmax.f32 %v296_v3, 0.0  ;;  %v320_v16 = vmax.f32 %v304_v4, 0.0  ;;  %v407_v21 = vpop.f32.mrb[6].mxu0  ;;  %v419_v22 = vpop.f32.mrb[6].mxu1 }
  0xe5   :  { %v266_v18 = vadd.f32 %v557_v19, %v243_v7  ;;  %v274_v20 = vadd.f32 %v557_v19, %v251_v8  ;;  %330 = vst.msk [vmem:[#allocation2 + $0x18] sm:$0xff] %vm326_vm1, %v313_v9  ;;  %338 = vst.msk [vmem:[#allocation2 + $0x58] sm:$0xff] %vm326_vm1, %v321_v10  ;;  %v246_v25 = vmul.f32 %v407_v21, %v552_v17  ;;  %v183_v27 = vpop.f32.mrb[7].mxu0  ;;  %v223_v28 = vpop.f32.mrb[7].mxu1  ;;  %p433_p4 = pnand %p432_p3, %p426_p0 }
  0xe6   :  { %v299_v23 = vadd.f32 %v283_v5, %v267_v11  ;;  %v307_v24 = vadd.f32 %v291_v6, %v275_v12  ;;  %v254_v26 = vmul.f32 %v419_v22, %v552_v17  ;;  %329 = vst.msk [vmem:[#allocation2 + $0x10] sm:$0xff] %vm326_vm1, %v312_v15  ;;  %337 = vst.msk [vmem:[#allocation2 + $0x50] sm:$0xff] %vm326_vm1, %v320_v16 }
  0xe7   :  { %v298_v29 = vadd.f32 %v282_v13, %v266_v18  ;;  %v306_v30 = vadd.f32 %v290_v14, %v274_v20  ;;  %v245_v33 = vmul.f32 %v552_v17, %v183_v27  ;;  %v253_v34 = vmul.f32 %v552_v17, %v223_v28 }
  0xe8   :  { %v315_v35 = vmax.f32 %v299_v23, 0.0  ;;  %v323_v36 = vmax.f32 %v307_v24, 0.0  ;;  %v269_v37 = vadd.f32 %v557_v19, %v246_v25  ;;  %v277_v38 = vadd.f32 %v557_v19, %v254_v26 }
  0xe9   :  { %v314_v41 = vmax.f32 %v298_v29, 0.0  ;;  %v322_v42 = vmax.f32 %v306_v30, 0.0  ;;  %v268_v43 = vadd.f32 %v557_v19, %v245_v33  ;;  %v276_v17 = vadd.f32 %v557_v19, %v253_v34 }
  0xea   :  { %332 = vst.msk [vmem:[#allocation2 + $0x28] sm:$0xff] %vm326_vm1, %v315_v35  ;;  %340 = vst.msk [vmem:[#allocation2 + $0x68] sm:$0xff] %vm326_vm1, %v323_v36  ;;  %v301_v44 = vadd.f32 %v285_v31, %v269_v37  ;;  %v309_v45 = vadd.f32 %v293_v32, %v277_v38 }
  0xeb   :  { %331 = vst.msk [vmem:[#allocation2 + $0x20] sm:$0xff] %vm326_vm1, %v314_v41  ;;  %339 = vst.msk [vmem:[#allocation2 + $0x60] sm:$0xff] %vm326_vm1, %v322_v42  ;;  %v300_v46 = vadd.f32 %v284_v39, %v268_v43  ;;  %v308_v47 = vadd.f32 %v292_v40, %v276_v17 }
  0xec   :  { %v317_v48 = vmax.f32 %v301_v44, 0.0  ;;  %v325_v49 = vmax.f32 %v309_v45, 0.0 }
  0xed   :  { %v316_v50 = vmax.f32 %v300_v46, 0.0  ;;  %v324_v51 = vmax.f32 %v308_v47, 0.0 }
  0xee   :  { %334 = vst.msk [vmem:[#allocation2 + $0x38] sm:$0xff] %vm326_vm1, %v317_v48  ;;  %342 = vst.msk [vmem:[#allocation2 + $0x78] sm:$0xff] %vm326_vm1, %v325_v49 }
  0xef   :  { %333 = vst.msk [vmem:[#allocation2 + $0x30] sm:$0xff] %vm326_vm1, %v316_v50  ;;  %341 = vst.msk [vmem:[#allocation2 + $0x70] sm:$0xff] %vm326_vm1, %v324_v51 }
  0xf0   :  { %436 = shalt.err (!%p433_p4)
}
  0xf1   :  { %s437_s8 = scalar_lea.hbm %s672_s5, 2048 }
  0xf2   :  { %p438_p5 = scmp.ne.s32.totalorder %s672_s5, %s437_s8  ;;  %p441_p6 = scmp.lt.u32.totalorder %s437_s8, %s672_s5 }
  0xf4   :  { %p443_p7 = pnand %p441_p6, %p438_p5 }
  0xf6   :  { %446 = shalt.err (!%p443_p7)
}
  0xf7   :  { %s450_s13 = smov 128   ;;  %s451_s14 = smov 8  }
  0xf8   :  { %354 = dma.vmem_to_hbm [thread:$0]  %s349_s3, 2048, %s672_s5, [#allocation3], %s450_s13, %s450_s13, %s451_s14  }
  0xf9   :  { %447 = dma.done.wait [#allocation3], 2048  }
  0xfa   :  { %448 = vsyncadd [#allocation3], 4294965248 }
  0xfb   :  { %358 = vsyncpa [#allocation3], 1 }

// kernel: resnet_block_nchw.4
= control target key start
LH: loop header
LB: loop body
LE: loop exit
PB: predicated region body
PF: predicated region fallthrough
CT: control target
= control target key end

     0   :  { %s2178_s15 = smov 0   ;;  %s2538_s0 = inlined_call_operand.vmem [shape: f32[2,10,10,8], index: 0, kind: input, shape index: {}]   ;;  %s2539_s1 = inlined_call_operand.vmem [shape: f32[9,8,8], index: 1, kind: input, shape index: {}]   ;;  %s2540_s2 = inlined_call_operand.vmem [shape: f32[1,8], index: 2, kind: input, shape index: {}]   ;;  %s2541_s3 = inlined_call_operand.vmem [shape: f32[1,8], index: 3, kind: input, shape index: {}]   ;;  %s2542_s4 = inlined_call_operand.vmem [shape: f32[2,8,8,8], index: 4, kind: output, shape index: {}]  }
   0x1 LB: > { %s1784_s16 = sadd.s32 4294967295, %s2150_s15   ;;  %p1788_p0 = scmp.ge.s32.totalorder %s2150_s15, 1  ;;  %s2150_s15 = sphi %s2178_s15, %s14_s15  }
   0x2   : > { %p162_p1 = scmp.lt.s32.totalorder %s2150_s15, 3 }
   0x4   : > { %p163_p2 = pnand %p1788_p0, %p162_p1 }
   0x5   : > { %v223_v0 = vld [vmem:[%s2539_s1] sm:$0xff] (!%p163_p2)  ;;  %p2189_p3 = scmp.lt.s32.totalorder (!%p163_p2), %s1784_s16, 1  ;;  %vm198_vm0 = vcmask (!%p163_p2), 64512   ;;  %v1800_v1 = vld [vmem:[%s2539_s1 + $0x8] sm:$0xff] (!%p163_p2)  ;;  %v1809_v2 = vld [vmem:[%s2539_s1 + $0x10] sm:$0xff] (!%p163_p2)  ;;  %v2152_v3 = vmov (!%p163_p2), 0.0  }
   0x6   : > { %166 = sbr.rel (%p163_p2) target bundleno = 340 (0x154), region = 36  ;;  %2132 = vmatprep.subr.mxu1 (!%p163_p2), %v223_v0  ;;  %2006 = vmatprep.subr.mxu0 (!%p163_p2), %v223_v0  ;;  %200 = vst.msk [vmem:[#allocation2 + $0x8] sm:$0xff] (!%p163_p2), %vm198_vm0, %v2152_v3  ;;  %199 = vst.msk [vmem:[#allocation2] sm:$0xff] (!%p163_p2), %vm198_vm0, %v2152_v3  ;;  %v1826_v10 = vld [vmem:[%s2539_s1 + $0x18] sm:$0xff] (!%p163_p2)  ;;  %v1843_v11 = vld [vmem:[%s2539_s1 + $0x20] sm:$0xff] (!%p163_p2) }
   0x7   : > { %201 = vst.msk [vmem:[#allocation2 + $0x10] sm:$0xff] (!%p163_p2), %vm198_vm0, %v2152_v3  ;;  %202 = vst.msk [vmem:[#allocation2 + $0x18] sm:$0xff] (!%p163_p2), %vm198_vm0, %v2152_v3  ;;  %2133 = vmatpush3.msra.mxu1 (!%p163_p2), %v223_v0  ;;  %2007 = vmatpush3.msra.mxu0 (!%p163_p2), %v223_v0  ;;  %v1860_v20 = vld [vmem:[%s2539_s1 + $0x28] sm:$0xff] (!%p163_p2)  ;;  %v1877_v21 = vld [vmem:[%s2539_s1 + $0x30] sm:$0xff] (!%p163_p2) }
   0x8   : > { %203 = vst.msk [vmem:[#allocation2 + $0x20] sm:$0xff] (!%p163_p2), %vm198_vm0, %v2152_v3  ;;  %204 = vst.msk [vmem:[#allocation2 + $0x28] sm:$0xff] (!%p163_p2), %vm198_vm0, %v2152_v3  ;;  %2020 = vmatprep.subr.mxu1 (!%p163_p2), %v1800_v1  ;;  %2034 = vmatprep.subr.mxu0 (!%p163_p2), %v1809_v2  ;;  %v1894_v32 = vld [vmem:[%s2539_s1 + $0x38] sm:$0xff] (!%p163_p2)  ;;  %v1911_v33 = vld [vmem:[%s2539_s1 + $0x40] sm:$0xff] (!%p163_p2) }
   0x9   : > { %205 = vst.msk [vmem:[#allocation2 + $0x30] sm:$0xff] (!%p163_p2), %vm198_vm0, %v2152_v3  ;;  %206 = vst.msk [vmem:[#allocation2 + $0x38] sm:$0xff] (!%p163_p2), %vm198_vm0, %v2152_v3 }
   0xd   : > { %s2545_s16 = smov (!%p2189_p3, %s1784_s16), 1  ;;  %v216_v40 = vld [vmem:[#allocation2 + $0x8] sm:$0xff]  ;;  %v215_v42 = vld [vmem:[#allocation2] sm:$0xff] }
   0xe   : > { %s2134_s24 = smul.u32 160, %s2545_s16  ;;  %v218_v52 = vld [vmem:[#allocation2 + $0x18] sm:$0xff]  ;;  %v217_v54 = vld [vmem:[#allocation2 + $0x10] sm:$0xff]  ;;  %s1924_s20 = sshll.u32 %s2545_s16, 6 }
   0xf   : > { %v220_v41 = vld [vmem:[#allocation2 + $0x28] sm:$0xff]  ;;  %v219_v43 = vld [vmem:[#allocation2 + $0x20] sm:$0xff]  ;;  %s2516_s23 = scalar_lea.vmem %s2542_s4, %s1924_s20 }
  0x10   : > { %s2215_s27 = scalar_lea.vmem %s2538_s0, %s2134_s24  ;;  %v222_v53 = vld [vmem:[#allocation2 + $0x38] sm:$0xff]  ;;  %v221_v55 = vld [vmem:[#allocation2 + $0x30] sm:$0xff] }
  0x11   : > { %v207_v4 = vld [vmem:[%s2215_s27] sm:$0xff]  ;;  %v208_v6 = vld [vmem:[%s2215_s27 + $0x10] sm:$0xff] }
  0x12   : > { %v2219_v5 = vld [vmem:[%s2215_s27 + $0x40] sm:$0xff]  ;;  %2008 = vmatprep.mubr.msk.f32.mxu0 %vm198_vm0, %v207_v4  ;;  %v2226_v7 = vld [vmem:[%s2215_s27 + $0x50] sm:$0xff] }
  0x13   : > { %2014 = vmatprep.mubr.msk.f32.mxu1 %vm198_vm0, %v2219_v5  ;;  %v2229_v8 = vld [vmem:[%s2215_s27 + $0x20] sm:$0xff]  ;;  %2009 = vmatmul.mubr.msk.f32.vlgmr.msra.gmra.mrb[0].mxu0 %vm198_vm0, %v208_v6  ;;  %v2246_v12 = vld [vmem:[%s2215_s27 + $0x30] sm:$0xff] }
  0x14   : > { %v2232_v9 = vld [vmem:[%s2215_s27 + $0x60] sm:$0xff]  ;;  %2015 = vmatmul.mubr.msk.f32.vlgmr.msra.gmra.mrb[0].mxu1 %vm198_vm0, %v2226_v7  ;;  %2011 = vmatprep.mubr.msk.f32.mxu0 %vm198_vm0, %v2229_v8  ;;  %v2249_v13 = vld [vmem:[%s2215_s27 + $0x70] sm:$0xff] }
  0x15   : > { %2021 = vmatpush3.msra.mxu1 %v1800_v1  ;;  %2017 = vmatprep.mubr.msk.f32.mxu1 %vm198_vm0, %v2232_v9  ;;  %v369_v14 = vld [vmem:[%s2215_s27 + $0x1] sm:$0xff]  ;;  %v370_v16 = vld [vmem:[%s2215_s27 + $0x11] sm:$0xff] }
  0x16   : > { %2035 = vmatpush3.msra.mxu0 %v1809_v2  ;;  %v532_v15 = vld [vmem:[%s2215_s27 + $0x2] sm:$0xff]  ;;  %2048 = vmatprep.subr.mxu1 %v1826_v10  ;;  %v533_v17 = vld [vmem:[%s2215_s27 + $0x12] sm:$0xff] }
  0x17   : > { %2062 = vmatprep.subr.mxu0 %v1843_v11  ;;  %2012 = vmatmul.mubr.msk.f32.gmra.mrb[2].mxu0 %vm198_vm0, %v2246_v12  ;;  %v2264_v18 = vld [vmem:[%s2215_s27 + $0x21] sm:$0xff]  ;;  %v2280_v22 = vld [vmem:[%s2215_s27 + $0x31] sm:$0xff] }
  0x18   : > { %2018 = vmatmul.mubr.msk.f32.gmra.mrb[2].mxu1 %vm198_vm0, %v2249_v13  ;;  %2036 = vmatprep.mubr.msk.f32.mxu0 %vm198_vm0, %v532_v15  ;;  %v2267_v19 = vld [vmem:[%s2215_s27 + $0x22] sm:$0xff]  ;;  %v2283_v23 = vld [vmem:[%s2215_s27 + $0x32] sm:$0xff] }
  0x19   : > { %2022 = vmatprep.mubr.msk.f32.mxu1 %vm198_vm0, %v369_v14  ;;  %v2286_v24 = vld [vmem:[%s2215_s27 + $0x41] sm:$0xff]  ;;  %v2300_v26 = vld [vmem:[%s2215_s27 + $0x51] sm:$0xff] }
  0x1a   : > { %v2291_v25 = vld [vmem:[%s2215_s27 + $0x42] sm:$0xff]  ;;  %v537_v27 = vld [vmem:[%s2215_s27 + $0x52] sm:$0xff] }
  0x1b   : > { %2037 = vmatmul.mubr.msk.f32.vlgmr.msra.gmra.mrb[4].mxu0 %vm198_vm0, %v533_v17  ;;  %v375_v28 = vld [vmem:[%s2215_s27 + $0x61] sm:$0xff]  ;;  %v376_v30 = vld [vmem:[%s2215_s27 + $0x71] sm:$0xff] }
  0x1c   : > { %2023 = vmatmul.mubr.msk.f32.vlgmr.msra.gmra.mrb[4].mxu1 %vm198_vm0, %v370_v16  ;;  %2039 = vmatprep.mubr.msk.f32.mxu0 %vm198_vm0, %v2267_v19  ;;  %v538_v29 = vld [vmem:[%s2215_s27 + $0x62] sm:$0xff]  ;;  %v539_v31 = vld [vmem:[%s2215_s27 + $0x72] sm:$0xff] }
  0x1d   : > { %2025 = vmatprep.mubr.msk.f32.mxu1 %vm198_vm0, %v2264_v18  ;;  %2049 = vmatpush3.msra.mxu1 %v1826_v10  ;;  %v1825_v34 = vld [vmem:[%s2215_s27 + $0x80] sm:$0xff]  ;;  %v1876_v37 = vld [vmem:[%s2215_s27 + $0x90] sm:$0xff] }
  0x1e   : > { %2063 = vmatpush3.msra.mxu0 %v1843_v11  ;;  %2076 = vmatprep.subr.mxu1 %v1860_v20  ;;  %v1842_v35 = vld [vmem:[%s2215_s27 + $0x81] sm:$0xff]  ;;  %v1893_v38 = vld [vmem:[%s2215_s27 + $0x91] sm:$0xff] }
  0x1f   : > { %2090 = vmatprep.subr.mxu0 %v1877_v21  ;;  %2040 = vmatmul.mubr.msk.f32.gmra.mrb[6].mxu0 %vm198_vm0, %v2283_v23  ;;  %v1859_v36 = vld [vmem:[%s2215_s27 + $0x82] sm:$0xff]  ;;  %v1910_v39 = vld [vmem:[%s2215_s27 + $0x92] sm:$0xff] }
  0x20   : > { %2026 = vmatmul.mubr.msk.f32.gmra.mrb[6].mxu1 %vm198_vm0, %v2280_v22  ;;  %2042 = vmatprep.mubr.msk.f32.mxu0 %vm198_vm0, %v2291_v25 }
  0x21   : > { %2028 = vmatprep.mubr.msk.f32.mxu1 %vm198_vm0, %v2286_v24 }
  0x23   : > { %2043 = vmatmul.mubr.msk.f32.gmra.mrb[8].mxu0 %vm198_vm0, %v537_v27 }
  0x24   : > { %2029 = vmatmul.mubr.msk.f32.gmra.mrb[8].mxu1 %vm198_vm0, %v2300_v26  ;;  %2045 = vmatprep.mubr.msk.f32.mxu0 %vm198_vm0, %v538_v29 }
  0x25   : > { %2031 = vmatprep.mubr.msk.f32.mxu1 %vm198_vm0, %v375_v28 }
  0x27   : > { %2046 = vmatmul.mubr.msk.f32.gmra.mrb[10].mxu0 %vm198_vm0, %v539_v31 }
  0x28   : > { %2032 = vmatmul.mubr.msk.f32.gmra.mrb[10].mxu1 %vm198_vm0, %v376_v30  ;;  %2064 = vmatprep.mubr.msk.f32.mxu0 %vm198_vm0, %v370_v16 }
  0x29   : > { %2050 = vmatprep.mubr.msk.f32.mxu1 %vm198_vm0, %v208_v6 }
  0x2b   : > { %2065 = vmatmul.mubr.msk.f32.vlgmr.msra.gmra.mrb[12].mxu0 %vm198_vm0, %v2264_v18 }
  0x2c   : > { %2051 = vmatmul.mubr.msk.f32.vlgmr.msra.gmra.mrb[12].mxu1 %vm198_vm0, %v2229_v8  ;;  %2067 = vmatprep.mubr.msk.f32.mxu0 %vm198_vm0, %v2280_v22 }
  0x2d   : > { %2053 = vmatprep.mubr.msk.f32.mxu1 %vm198_vm0, %v2246_v12  ;;  %2077 = vmatpush3.msra.mxu1 %v1860_v20 }
  0x2e   : > { %2091 = vmatpush3.msra.mxu0 %v1877_v21  ;;  %2104 = vmatprep.subr.mxu1 %v1894_v32 }
  0x2f   : > { %2118 = vmatprep.subr.mxu0 %v1911_v33  ;;  %2068 = vmatmul.mubr.msk.f32.gmra.mrb[14].mxu0 %vm198_vm0, %v2286_v24 }
  0x30   : > { %2054 = vmatmul.mubr.msk.f32.gmra.mrb[14].mxu1 %vm198_vm0, %v2219_v5  ;;  %2070 = vmatprep.mubr.msk.f32.mxu0 %vm198_vm0, %v2300_v26 }
  0x31   : > { %2056 = vmatprep.mubr.msk.f32.mxu1 %vm198_vm0, %v2226_v7 }
  0x33   : > { %2071 = vmatmul.mubr.msk.f32.gmra.mrb[16].mxu0 %vm198_vm0, %v375_v28 }
  0x34   : > { %2057 = vmatmul.mubr.msk.f32.gmra.mrb[16].mxu1 %vm198_vm0, %v2232_v9  ;;  %2073 = vmatprep.mubr.msk.f32.mxu0 %vm198_vm0, %v376_v30 }
  0x35   : > { %2059 = vmatprep.mubr.msk.f32.mxu1 %vm198_vm0, %v2249_v13 }
  0x37   : > { %2074 = vmatmul.mubr.msk.f32.gmra.mrb[18].mxu0 %vm198_vm0, %v1842_v35 }
  0x38   : > { %2060 = vmatmul.mubr.msk.f32.gmra.mrb[18].mxu1 %vm198_vm0, %v1825_v34  ;;  %2092 = vmatprep.mubr.msk.f32.mxu0 %vm198_vm0, %v2229_v8 }
  0x39   : > { %2078 = vmatprep.mubr.msk.f32.mxu1 %vm198_vm0, %v533_v17 }
  0x3b   : > { %2093 = vmatmul.mubr.msk.f32.vlgmr.msra.gmra.mrb[20].mxu0 %vm198_vm0, %v2246_v12 }
  0x3c   : > { %2079 = vmatmul.mubr.msk.f32.vlgmr.msra.gmra.mrb[20].mxu1 %vm198_vm0, %v2267_v19  ;;  %2095 = vmatprep.mubr.msk.f32.mxu0 %vm198_vm0, %v2219_v5 }
  0x3d   : > { %2081 = vmatprep.mubr.msk.f32.mxu1 %vm198_vm0, %v2283_v23  ;;  %2105 = vmatpush3.msra.mxu1 %v1894_v32 }
  0x3e   : > { %2119 = vmatpush3.msra.mxu0 %v1911_v33 }
  0x3f   : > { %2096 = vmatmul.mubr.msk.f32.gmra.mrb[22].mxu0 %vm198_vm0, %v2226_v7 }
  0x40   : > { %2082 = vmatmul.mubr.msk.f32.gmra.mrb[22].mxu1 %vm198_vm0, %v2291_v25  ;;  %2098 = vmatprep.mubr.msk.f32.mxu0 %vm198_vm0, %v2232_v9 }
  0x41   : > { %2084 = vmatprep.mubr.msk.f32.mxu1 %vm198_vm0, %v537_v27 }
  0x43   : > { %2099 = vmatmul.mubr.msk.f32.gmra.mrb[24].mxu0 %vm198_vm0, %v2249_v13 }
  0x44   : > { %2085 = vmatmul.mubr.msk.f32.gmra.mrb[24].mxu1 %vm198_vm0, %v538_v29  ;;  %2101 = vmatprep.mubr.msk.f32.mxu0 %vm198_vm0, %v1825_v34 }
  0x45   : > { %2087 = vmatprep.mubr.msk.f32.mxu1 %vm198_vm0, %v539_v31 }
  0x47   : > { %2102 = vmatmul.mubr.msk.f32.gmra.mrb[26].mxu0 %vm198_vm0, %v1876_v37 }
  0x48   : > { %2088 = vmatmul.mubr.msk.f32.gmra.mrb[26].mxu1 %vm198_vm0, %v1859_v36  ;;  %2120 = vmatprep.mubr.msk.f32.mxu0 %vm198_vm0, %v2267_v19 }
  0x49   : > { %2106 = vmatprep.mubr.msk.f32.mxu1 %vm198_vm0, %v2264_v18 }
  0x4b   : > { %2121 = vmatmul.mubr.msk.f32.vlgmr.msra.gmra.mrb[28].mxu0 %vm198_vm0, %v2283_v23 }
  0x4c   : > { %2107 = vmatmul.mubr.msk.f32.vlgmr.msra.gmra.mrb[28].mxu1 %vm198_vm0, %v2280_v22  ;;  %2123 = vmatprep.mubr.msk.f32.mxu0 %vm198_vm0, %v2291_v25 }
  0x4d   : > { %2109 = vmatprep.mubr.msk.f32.mxu1 %vm198_vm0, %v2286_v24 }
  0x4f   : > { %2124 = vmatmul.mubr.msk.f32.gmra.mrb[30].mxu0 %vm198_vm0, %v537_v27 }
  0x50   : > { %2110 = vmatmul.mubr.msk.f32.gmra.mrb[30].mxu1 %vm198_vm0, %v2300_v26  ;;  %2126 = vmatprep.mubr.msk.f32.mxu0 %vm198_vm0, %v538_v29 }
  0x51   : > { %2112 = vmatprep.mubr.msk.f32.mxu1 %vm198_vm0, %v375_v28 }
  0x53   : > { %2127 = vmatmul.mubr.msk.f32.gmra.mrb[32].mxu0 %vm198_vm0, %v539_v31 }
  0x54   : > { %2113 = vmatmul.mubr.msk.f32.gmra.mrb[32].mxu1 %vm198_vm0, %v376_v30  ;;  %2129 = vmatprep.mubr.msk.f32.mxu0 %vm198_vm0, %v1859_v36 }
  0x55   : > { %2115 = vmatprep.mubr.msk.f32.mxu1 %vm198_vm0, %v1842_v35 }
  0x57   : > { %2130 = vmatmul.mubr.msk.f32.gmra.mrb[34].mxu0 %vm198_vm0, %v1910_v39 }
  0x58   : > { %2116 = vmatmul.mubr.msk.f32.gmra.mrb[34].mxu1 %vm198_vm0, %v1893_v38 }
  0xe6   : > { %v2010_v44 = vpop.f32.mrb[0].mxu0 }
  0xe7   : > { %v2016_v45 = vpop.f32.mrb[0].mxu1  ;;  %v354_v46 = vadd.f32 %v2010_v44, %v216_v40  ;;  %v314_v48 = vpop.f32.mrb[1].mxu0 }
  0xe8   : > { %v358_v47 = vadd.f32 %v2016_v45, %v220_v41  ;;  %v334_v49 = vpop.f32.mrb[1].mxu1  ;;  %v353_v50 = vadd.f32 %v314_v48, %v215_v42 }
  0xe9   : > { %v357_v51 = vadd.f32 %v334_v49, %v219_v43  ;;  %362 = vst.msk [vmem:[#allocation2 + $0x8] sm:$0xff] %vm198_vm0, %v354_v46 }
  0xea   : > { %366 = vst.msk [vmem:[#allocation2 + $0x28] sm:$0xff] %vm198_vm0, %v358_v47  ;;  %361 = vst.msk [vmem:[#allocation2] sm:$0xff] %vm198_vm0, %v353_v50  ;;  %v2013_v56 = vpop.f32.mrb[2].mxu0 }
  0xeb   : > { %365 = vst.msk [vmem:[#allocation2 + $0x20] sm:$0xff] %vm198_vm0, %v357_v51  ;;  %v2019_v57 = vpop.f32.mrb[2].mxu1  ;;  %v356_v58 = vadd.f32 %v2013_v56, %v218_v52  ;;  %v324_v60 = vpop.f32.mrb[3].mxu0 }
  0xec   : > { %v360_v59 = vadd.f32 %v2019_v57, %v222_v53  ;;  %v344_v61 = vpop.f32.mrb[3].mxu1  ;;  %v355_v62 = vadd.f32 %v324_v60, %v217_v54 }
  0xed   : > { %v359_v63 = vadd.f32 %v344_v61, %v221_v55  ;;  %364 = vst.msk [vmem:[#allocation2 + $0x18] sm:$0xff] %vm198_vm0, %v356_v58 }
  0xee   : > { %368 = vst.msk [vmem:[#allocation2 + $0x38] sm:$0xff] %vm198_vm0, %v360_v59  ;;  %363 = vst.msk [vmem:[#allocation2 + $0x10] sm:$0xff] %vm198_vm0, %v355_v62  ;;  %v2038_v1 = vpop.f32.mrb[4].mxu0 }
  0xef   : > { %367 = vst.msk [vmem:[#allocation2 + $0x30] sm:$0xff] %vm198_vm0, %v359_v63  ;;  %v2024_v0 = vpop.f32.mrb[4].mxu1  ;;  %v640_v3 = vpop.f32.mrb[5].mxu0 }
  0xf0   : > { %v477_v2 = vpop.f32.mrb[5].mxu1  ;;  %v378_v4 = vld [vmem:[#allocation2 + $0x8] sm:$0xff] }
  0xf1   : > { %v517_v5 = vadd.f32 %v2024_v0, %v378_v4  ;;  %v377_v6 = vld [vmem:[#allocation2] sm:$0xff]  ;;  %v382_v16 = vld [vmem:[#allocation2 + $0x28] sm:$0xff] }
  0xf2   : > { %v516_v7 = vadd.f32 %v477_v2, %v377_v6  ;;  %v2041_v9 = vpop.f32.mrb[6].mxu0  ;;  %v381_v20 = vld [vmem:[#allocation2 + $0x20] sm:$0xff] }
  0xf3   : > { %v2027_v8 = vpop.f32.mrb[6].mxu1  ;;  %525 = vst.msk [vmem:[#allocation2 + $0x8] sm:$0xff] %vm198_vm0, %v517_v5  ;;  %v650_v11 = vpop.f32.mrb[7].mxu0 }
  0xf4   : > { %v487_v10 = vpop.f32.mrb[7].mxu1  ;;  %524 = vst.msk [vmem:[#allocation2] sm:$0xff] %vm198_vm0, %v516_v7  ;;  %v380_v12 = vld [vmem:[#allocation2 + $0x18] sm:$0xff] }
  0xf5   : > { %v519_v13 = vadd.f32 %v2027_v8, %v380_v12  ;;  %v379_v14 = vld [vmem:[#allocation2 + $0x10] sm:$0xff]  ;;  %v384_v25 = vld [vmem:[#allocation2 + $0x38] sm:$0xff] }
  0xf6   : > { %v518_v15 = vadd.f32 %v487_v10, %v379_v14  ;;  %v2044_v18 = vpop.f32.mrb[8].mxu0  ;;  %v383_v31 = vld [vmem:[#allocation2 + $0x30] sm:$0xff] }
  0xf7   : > { %v2030_v17 = vpop.f32.mrb[8].mxu1  ;;  %527 = vst.msk [vmem:[#allocation2 + $0x18] sm:$0xff] %vm198_vm0, %v519_v13  ;;  %v660_v22 = vpop.f32.mrb[9].mxu0 }
  0xf8   : > { %v521_v19 = vadd.f32 %v2030_v17, %v382_v16  ;;  %v497_v21 = vpop.f32.mrb[9].mxu1  ;;  %526 = vst.msk [vmem:[#allocation2 + $0x10] sm:$0xff] %vm198_vm0, %v518_v15 }
  0xf9   : > { %v520_v23 = vadd.f32 %v497_v21, %v381_v20 }
  0xfa   : > { %529 = vst.msk [vmem:[#allocation2 + $0x28] sm:$0xff] %vm198_vm0, %v521_v19  ;;  %v541_v24 = vld [vmem:[#allocation2 + $0x8] sm:$0xff]  ;;  %v2047_v27 = vpop.f32.mrb[10].mxu0 }
  0xfb   : > { %528 = vst.msk [vmem:[#allocation2 + $0x20] sm:$0xff] %vm198_vm0, %v520_v23  ;;  %v2033_v26 = vpop.f32.mrb[10].mxu1  ;;  %v680_v28 = vadd.f32 %v2038_v1, %v541_v24  ;;  %v540_v29 = vld [vmem:[#allocation2] sm:$0xff]  ;;  %v670_v33 = vpop.f32.mrb[11].mxu0 }
  0xfc   : > { %v523_v30 = vadd.f32 %v2033_v26, %v384_v25  ;;  %v507_v32 = vpop.f32.mrb[11].mxu1  ;;  %v679_v34 = vadd.f32 %v640_v3, %v540_v29 }
  0xfd   : > { %v522_v35 = vadd.f32 %v507_v32, %v383_v31  ;;  %688 = vst.msk [vmem:[#allocation2 + $0x8] sm:$0xff] %vm198_vm0, %v680_v28 }
  0xfe   : > { %531 = vst.msk [vmem:[#allocation2 + $0x38] sm:$0xff] %vm198_vm0, %v523_v30  ;;  %687 = vst.msk [vmem:[#allocation2] sm:$0xff] %vm198_vm0, %v679_v34  ;;  %v543_v36 = vld [vmem:[#allocation2 + $0x18] sm:$0xff]  ;;  %v2066_v38 = vpop.f32.mrb[12].mxu0 }
  0xff   : > { %530 = vst.msk [vmem:[#allocation2 + $0x30] sm:$0xff] %vm198_vm0, %v522_v35  ;;  %v2052_v37 = vpop.f32.mrb[12].mxu1  ;;  %v682_v39 = vadd.f32 %v2041_v9, %v543_v36  ;;  %v542_v40 = vld [vmem:[#allocation2 + $0x10] sm:$0xff]  ;;  %v967_v42 = vpop.f32.mrb[13].mxu0 }
 0x100   : > { %v804_v41 = vpop.f32.mrb[13].mxu1  ;;  %v681_v43 = vadd.f32 %v650_v11, %v542_v40 }
 0x101   : > { %v545_v44 = vld [vmem:[#allocation2 + $0x28] sm:$0xff]  ;;  %690 = vst.msk [vmem:[#allocation2 + $0x18] sm:$0xff] %vm198_vm0, %v682_v39 }
 0x102   : > { %v684_v45 = vadd.f32 %v2044_v18, %v545_v44  ;;  %v544_v46 = vld [vmem:[#allocation2 + $0x20] sm:$0xff]  ;;  %689 = vst.msk [vmem:[#allocation2 + $0x10] sm:$0xff] %vm198_vm0, %v681_v43  ;;  %v2069_v49 = vpop.f32.mrb[14].mxu0 }
 0x103   : > { %v683_v47 = vadd.f32 %v660_v22, %v544_v46  ;;  %v2055_v48 = vpop.f32.mrb[14].mxu1  ;;  %v977_v51 = vpop.f32.mrb[15].mxu0 }
 0x104   : > { %692 = vst.msk [vmem:[#allocation2 + $0x28] sm:$0xff] %vm198_vm0, %v684_v45  ;;  %v814_v50 = vpop.f32.mrb[15].mxu1  ;;  %v705_v52 = vld [vmem:[#allocation2 + $0x8] sm:$0xff] }
 0x105   : > { %691 = vst.msk [vmem:[#allocation2 + $0x20] sm:$0xff] %vm198_vm0, %v683_v47  ;;  %v547_v53 = vld [vmem:[#allocation2 + $0x38] sm:$0xff]  ;;  %v844_v54 = vadd.f32 %v2052_v37, %v705_v52  ;;  %v704_v55 = vld [vmem:[#allocation2] sm:$0xff] }
 0x106   : > { %v686_v56 = vadd.f32 %v2047_v27, %v547_v53  ;;  %v546_v57 = vld [vmem:[#allocation2 + $0x30] sm:$0xff]  ;;  %v843_v58 = vadd.f32 %v804_v41, %v704_v55  ;;  %v2072_v61 = vpop.f32.mrb[16].mxu0 }
 0x107   : > { %v685_v59 = vadd.f32 %v670_v33, %v546_v57  ;;  %v2058_v60 = vpop.f32.mrb[16].mxu1  ;;  %852 = vst.msk [vmem:[#allocation2 + $0x8] sm:$0xff] %vm198_vm0, %v844_v54  ;;  %v987_v63 = vpop.f32.mrb[17].mxu0 }
 0x108   : > { %694 = vst.msk [vmem:[#allocation2 + $0x38] sm:$0xff] %vm198_vm0, %v686_v56  ;;  %v824_v62 = vpop.f32.mrb[17].mxu1  ;;  %851 = vst.msk [vmem:[#allocation2] sm:$0xff] %vm198_vm0, %v843_v58  ;;  %v707_v0 = vld [vmem:[#allocation2 + $0x18] sm:$0xff] }
 0x109   : > { %693 = vst.msk [vmem:[#allocation2 + $0x30] sm:$0xff] %vm198_vm0, %v685_v59  ;;  %v846_v1 = vadd.f32 %v2055_v48, %v707_v0  ;;  %v706_v2 = vld [vmem:[#allocation2 + $0x10] sm:$0xff] }
 0x10a   : > { %v845_v3 = vadd.f32 %v814_v50, %v706_v2  ;;  %v2075_v6 = vpop.f32.mrb[18].mxu0 }
 0x10b   : > { %v709_v4 = vld [vmem:[#allocation2 + $0x28] sm:$0xff]  ;;  %v2061_v5 = vpop.f32.mrb[18].mxu1  ;;  %854 = vst.msk [vmem:[#allocation2 + $0x18] sm:$0xff] %vm198_vm0, %v846_v1  ;;  %v997_v10 = vpop.f32.mrb[19].mxu0 }
 0x10c   : > { %v848_v7 = vadd.f32 %v2058_v60, %v709_v4  ;;  %v708_v8 = vld [vmem:[#allocation2 + $0x20] sm:$0xff]  ;;  %v834_v9 = vpop.f32.mrb[19].mxu1  ;;  %853 = vst.msk [vmem:[#allocation2 + $0x10] sm:$0xff] %vm198_vm0, %v845_v3 }
 0x10d   : > { %v847_v11 = vadd.f32 %v824_v62, %v708_v8 }
 0x10e   : > { %856 = vst.msk [vmem:[#allocation2 + $0x28] sm:$0xff] %vm198_vm0, %v848_v7  ;;  %v868_v12 = vld [vmem:[#allocation2 + $0x8] sm:$0xff]  ;;  %v2432_v15 = vpop.f32.mrb[20].mxu0 }
 0x10f   : > { %855 = vst.msk [vmem:[#allocation2 + $0x20] sm:$0xff] %vm198_vm0, %v847_v11  ;;  %v711_v13 = vld [vmem:[#allocation2 + $0x38] sm:$0xff]  ;;  %v2080_v14 = vpop.f32.mrb[20].mxu1  ;;  %v1007_v16 = vadd.f32 %v2066_v38, %v868_v12  ;;  %v867_v17 = vld [vmem:[#allocation2] sm:$0xff]  ;;  %v2434_v21 = vpop.f32.mrb[21].mxu0 }
 0x110   : > { %v850_v18 = vadd.f32 %v2061_v5, %v711_v13  ;;  %v710_v19 = vld [vmem:[#allocation2 + $0x30] sm:$0xff]  ;;  %v1130_v20 = vpop.f32.mrb[21].mxu1  ;;  %v1006_v22 = vadd.f32 %v967_v42, %v867_v17 }
 0x111   : > { %v849_v23 = vadd.f32 %v834_v9, %v710_v19  ;;  %1015 = vst.msk [vmem:[#allocation2 + $0x8] sm:$0xff] %vm198_vm0, %v1007_v16 }
 0x112   : > { %858 = vst.msk [vmem:[#allocation2 + $0x38] sm:$0xff] %vm198_vm0, %v850_v18  ;;  %1014 = vst.msk [vmem:[#allocation2] sm:$0xff] %vm198_vm0, %v1006_v22  ;;  %v870_v24 = vld [vmem:[#allocation2 + $0x18] sm:$0xff]  ;;  %v2440_v26 = vpop.f32.mrb[22].mxu0 }
 0x113   : > { %857 = vst.msk [vmem:[#allocation2 + $0x30] sm:$0xff] %vm198_vm0, %v849_v23  ;;  %v2083_v25 = vpop.f32.mrb[22].mxu1  ;;  %v1009_v27 = vadd.f32 %v2069_v49, %v870_v24  ;;  %v869_v28 = vld [vmem:[#allocation2 + $0x10] sm:$0xff]  ;;  %v2442_v30 = vpop.f32.mrb[23].mxu0 }
 0x114   : > { %v1140_v29 = vpop.f32.mrb[23].mxu1  ;;  %v1008_v31 = vadd.f32 %v977_v51, %v869_v28 }
 0x115   : > { %v872_v32 = vld [vmem:[#allocation2 + $0x28] sm:$0xff]  ;;  %1017 = vst.msk [vmem:[#allocation2 + $0x18] sm:$0xff] %vm198_vm0, %v1009_v27 }
 0x116   : > { %v1011_v33 = vadd.f32 %v2072_v61, %v872_v32  ;;  %v871_v34 = vld [vmem:[#allocation2 + $0x20] sm:$0xff]  ;;  %1016 = vst.msk [vmem:[#allocation2 + $0x10] sm:$0xff] %vm198_vm0, %v1008_v31  ;;  %v2446_v37 = vpop.f32.mrb[24].mxu0 }
 0x117   : > { %v1010_v35 = vadd.f32 %v987_v63, %v871_v34  ;;  %v2086_v36 = vpop.f32.mrb[24].mxu1  ;;  %v2449_v39 = vpop.f32.mrb[25].mxu0 }
 0x118   : > { %1019 = vst.msk [vmem:[#allocation2 + $0x28] sm:$0xff] %vm198_vm0, %v1011_v33  ;;  %v1150_v38 = vpop.f32.mrb[25].mxu1  ;;  %v1031_v40 = vld [vmem:[#allocation2 + $0x8] sm:$0xff] }
 0x119   : > { %1018 = vst.msk [vmem:[#allocation2 + $0x20] sm:$0xff] %vm198_vm0, %v1010_v35  ;;  %v874_v41 = vld [vmem:[#allocation2 + $0x38] sm:$0xff]  ;;  %v1170_v42 = vadd.f32 %v2080_v14, %v1031_v40  ;;  %v1030_v43 = vld [vmem:[#allocation2] sm:$0xff] }
 0x11a   : > { %v1013_v44 = vadd.f32 %v2075_v6, %v874_v41  ;;  %v873_v45 = vld [vmem:[#allocation2 + $0x30] sm:$0xff]  ;;  %v1169_v46 = vadd.f32 %v1130_v20, %v1030_v43  ;;  %v2452_v49 = vpop.f32.mrb[26].mxu0 }
 0x11b   : > { %v1012_v47 = vadd.f32 %v997_v10, %v873_v45  ;;  %v2089_v48 = vpop.f32.mrb[26].mxu1  ;;  %1178 = vst.msk [vmem:[#allocation2 + $0x8] sm:$0xff] %vm198_vm0, %v1170_v42  ;;  %v1324_v51 = vpop.f32.mrb[27].mxu0 }
 0x11c   : > { %1021 = vst.msk [vmem:[#allocation2 + $0x38] sm:$0xff] %vm198_vm0, %v1013_v44  ;;  %v1160_v50 = vpop.f32.mrb[27].mxu1  ;;  %1177 = vst.msk [vmem:[#allocation2] sm:$0xff] %vm198_vm0, %v1169_v46  ;;  %v1033_v52 = vld [vmem:[#allocation2 + $0x18] sm:$0xff] }
 0x11d   : > { %1020 = vst.msk [vmem:[#allocation2 + $0x30] sm:$0xff] %vm198_vm0, %v1012_v47  ;;  %v1172_v53 = vadd.f32 %v2083_v25, %v1033_v52  ;;  %v1032_v54 = vld [vmem:[#allocation2 + $0x10] sm:$0xff] }
 0x11e   : > { %v1171_v55 = vadd.f32 %v1140_v29, %v1032_v54  ;;  %v2458_v58 = vpop.f32.mrb[28].mxu0 }
 0x11f   : > { %v1035_v56 = vld [vmem:[#allocation2 + $0x28] sm:$0xff]  ;;  %v2108_v57 = vpop.f32.mrb[28].mxu1  ;;  %1180 = vst.msk [vmem:[#allocation2 + $0x18] sm:$0xff] %vm198_vm0, %v1172_v53  ;;  %v2461_v62 = vpop.f32.mrb[29].mxu0 }
 0x120   : > { %v1174_v59 = vadd.f32 %v2086_v36, %v1035_v56  ;;  %v1034_v60 = vld [vmem:[#allocation2 + $0x20] sm:$0xff]  ;;  %v1457_v61 = vpop.f32.mrb[29].mxu1  ;;  %1179 = vst.msk [vmem:[#allocation2 + $0x10] sm:$0xff] %vm198_vm0, %v1171_v55 }
 0x121   : > { %v1173_v63 = vadd.f32 %v1150_v38, %v1034_v60 }
 0x122   : > { %1182 = vst.msk [vmem:[#allocation2 + $0x28] sm:$0xff] %vm198_vm0, %v1174_v59  ;;  %v1195_v0 = vld [vmem:[#allocation2 + $0x8] sm:$0xff]  ;;  %v2466_v3 = vpop.f32.mrb[30].mxu0  ;;  %v1920_v59 = vld [vmem:[%s2540_s2] ss:$0 sm:$0xff] }
 0x123   : > { %1181 = vst.msk [vmem:[#allocation2 + $0x20] sm:$0xff] %vm198_vm0, %v1173_v63  ;;  %v1037_v1 = vld [vmem:[#allocation2 + $0x38] sm:$0xff]  ;;  %v2111_v2 = vpop.f32.mrb[30].mxu1  ;;  %v1334_v4 = vadd.f32 %v2432_v15, %v1195_v0  ;;  %v1194_v5 = vld [vmem:[#allocation2] sm:$0xff]  ;;  %v2469_v9 = vpop.f32.mrb[31].mxu0 }
 0x124   : > { %v1176_v6 = vadd.f32 %v2089_v48, %v1037_v1  ;;  %v1036_v7 = vld [vmem:[#allocation2 + $0x30] sm:$0xff]  ;;  %v1467_v8 = vpop.f32.mrb[31].mxu1  ;;  %v1333_v10 = vadd.f32 %v2434_v21, %v1194_v5 }
 0x125   : > { %v1175_v11 = vadd.f32 %v1160_v50, %v1036_v7  ;;  %1342 = vst.msk [vmem:[#allocation2 + $0x8] sm:$0xff] %vm198_vm0, %v1334_v4 }
 0x126   : > { %1184 = vst.msk [vmem:[#allocation2 + $0x38] sm:$0xff] %vm198_vm0, %v1176_v6  ;;  %1341 = vst.msk [vmem:[#allocation2] sm:$0xff] %vm198_vm0, %v1333_v10  ;;  %v1197_v12 = vld [vmem:[#allocation2 + $0x18] sm:$0xff]  ;;  %v2128_v14 = vpop.f32.mrb[32].mxu0 }
 0x127   : > { %1183 = vst.msk [vmem:[#allocation2 + $0x30] sm:$0xff] %vm198_vm0, %v1175_v11  ;;  %v2114_v13 = vpop.f32.mrb[32].mxu1  ;;  %v1336_v15 = vadd.f32 %v2440_v26, %v1197_v12  ;;  %v1196_v16 = vld [vmem:[#allocation2 + $0x10] sm:$0xff]  ;;  %v1640_v18 = vpop.f32.mrb[33].mxu0 }
 0x128   : > { %v1477_v17 = vpop.f32.mrb[33].mxu1  ;;  %v1335_v19 = vadd.f32 %v2442_v30, %v1196_v16 }
 0x129   : > { %v1199_v20 = vld [vmem:[#allocation2 + $0x28] sm:$0xff]  ;;  %1344 = vst.msk [vmem:[#allocation2 + $0x18] sm:$0xff] %vm198_vm0, %v1336_v15 }
 0x12a   : > { %v1338_v21 = vadd.f32 %v2446_v37, %v1199_v20  ;;  %v1198_v22 = vld [vmem:[#allocation2 + $0x20] sm:$0xff]  ;;  %1343 = vst.msk [vmem:[#allocation2 + $0x10] sm:$0xff] %vm198_vm0, %v1335_v19  ;;  %v2131_v25 = vpop.f32.mrb[34].mxu0 }
 0x12b   : > { %v1337_v23 = vadd.f32 %v2449_v39, %v1198_v22  ;;  %v2117_v24 = vpop.f32.mrb[34].mxu1  ;;  %v1650_v27 = vpop.f32.mrb[35].mxu0 }
 0x12c   : > { %1346 = vst.msk [vmem:[#allocation2 + $0x28] sm:$0xff] %vm198_vm0, %v1338_v21  ;;  %v1487_v26 = vpop.f32.mrb[35].mxu1  ;;  %v1358_v28 = vld [vmem:[#allocation2 + $0x8] sm:$0xff] }
 0x12d   : > { %1345 = vst.msk [vmem:[#allocation2 + $0x20] sm:$0xff] %vm198_vm0, %v1337_v23  ;;  %v1201_v29 = vld [vmem:[#allocation2 + $0x38] sm:$0xff]  ;;  %v1497_v30 = vadd.f32 %v2108_v57, %v1358_v28  ;;  %v1357_v31 = vld [vmem:[#allocation2] sm:$0xff] }
 0x12e   : > { %v1340_v32 = vadd.f32 %v2452_v49, %v1201_v29  ;;  %v1200_v33 = vld [vmem:[#allocation2 + $0x30] sm:$0xff]  ;;  %v1496_v34 = vadd.f32 %v1457_v61, %v1357_v31 }
 0x12f   : > { %v1339_v35 = vadd.f32 %v1324_v51, %v1200_v33  ;;  %1505 = vst.msk [vmem:[#allocation2 + $0x8] sm:$0xff] %vm198_vm0, %v1497_v30 }
 0x130   : > { %1348 = vst.msk [vmem:[#allocation2 + $0x38] sm:$0xff] %vm198_vm0, %v1340_v32  ;;  %1504 = vst.msk [vmem:[#allocation2] sm:$0xff] %vm198_vm0, %v1496_v34  ;;  %v1360_v36 = vld [vmem:[#allocation2 + $0x18] sm:$0xff] }
 0x131   : > { %1347 = vst.msk [vmem:[#allocation2 + $0x30] sm:$0xff] %vm198_vm0, %v1339_v35  ;;  %v1499_v37 = vadd.f32 %v2111_v2, %v1360_v36  ;;  %v1359_v38 = vld [vmem:[#allocation2 + $0x10] sm:$0xff] }
 0x132   : > { %v1498_v39 = vadd.f32 %v1467_v8, %v1359_v38 }
 0x133   : > { %v1362_v40 = vld [vmem:[#allocation2 + $0x28] sm:$0xff]  ;;  %1507 = vst.msk [vmem:[#allocation2 + $0x18] sm:$0xff] %vm198_vm0, %v1499_v37 }
 0x134   : > { %v1501_v41 = vadd.f32 %v2114_v13, %v1362_v40  ;;  %v1361_v42 = vld [vmem:[#allocation2 + $0x20] sm:$0xff]  ;;  %1506 = vst.msk [vmem:[#allocation2 + $0x10] sm:$0xff] %vm198_vm0, %v1498_v39 }
 0x135   : > { %v1500_v43 = vadd.f32 %v1477_v17, %v1361_v42 }
 0x136   : > { %1509 = vst.msk [vmem:[#allocation2 + $0x28] sm:$0xff] %vm198_vm0, %v1501_v41  ;;  %v1521_v44 = vld [vmem:[#allocation2 + $0x8] sm:$0xff] }
 0x137   : > { %1508 = vst.msk [vmem:[#allocation2 + $0x20] sm:$0xff] %vm198_vm0, %v1500_v43  ;;  %v1364_v45 = vld [vmem:[#allocation2 + $0x38] sm:$0xff]  ;;  %v1660_v46 = vadd.f32 %v2458_v58, %v1521_v44  ;;  %v1520_v47 = vld [vmem:[#allocation2] sm:$0xff] }
 0x138   : > { %v1503_v48 = vadd.f32 %v2117_v24, %v1364_v45  ;;  %v1363_v49 = vld [vmem:[#allocation2 + $0x30] sm:$0xff]  ;;  %v1659_v50 = vadd.f32 %v2461_v62, %v1520_v47  ;;  %v1921_v62 = vld [vmem:[%s2541_s3] ss:$0 sm:$0xff] }
 0x139   : > { %v1502_v51 = vadd.f32 %v1487_v26, %v1363_v49  ;;  %1668 = vst.msk [vmem:[#allocation2 + $0x8] sm:$0xff] %vm198_vm0, %v1660_v46 }
 0x13a   : > { %1511 = vst.msk [vmem:[#allocation2 + $0x38] sm:$0xff] %vm198_vm0, %v1503_v48  ;;  %1667 = vst.msk [vmem:[#allocation2] sm:$0xff] %vm198_vm0, %v1659_v50  ;;  %v1523_v52 = vld [vmem:[#allocation2 + $0x18] sm:$0xff] }
 0x13b   : > { %1510 = vst.msk [vmem:[#allocation2 + $0x30] sm:$0xff] %vm198_vm0, %v1502_v51  ;;  %v1662_v53 = vadd.f32 %v2466_v3, %v1523_v52  ;;  %v1522_v54 = vld [vmem:[#allocation2 + $0x10] sm:$0xff] }
 0x13c   : > { %v1661_v55 = vadd.f32 %v2469_v9, %v1522_v54 }
 0x13d   : > { %v1525_v56 = vld [vmem:[#allocation2 + $0x28] sm:$0xff]  ;;  %1670 = vst.msk [vmem:[#allocation2 + $0x18] sm:$0xff] %vm198_vm0, %v1662_v53 }
 0x13e   : > { %v1664_v57 = vadd.f32 %v2128_v14, %v1525_v56  ;;  %v1524_v58 = vld [vmem:[#allocation2 + $0x20] sm:$0xff]  ;;  %1669 = vst.msk [vmem:[#allocation2 + $0x10] sm:$0xff] %vm198_vm0, %v1661_v55 }
 0x13f   : > { %v1663_v60 = vadd.f32 %v1640_v18, %v1524_v58 }
 0x140   : > { %1672 = vst.msk [vmem:[#allocation2 + $0x28] sm:$0xff] %vm198_vm0, %v1664_v57  ;;  %v1676_v61 = vld [vmem:[#allocation2 + $0x8] sm:$0xff] }
 0x141   : > { %1671 = vst.msk [vmem:[#allocation2 + $0x20] sm:$0xff] %vm198_vm0, %v1663_v60  ;;  %v1527_v63 = vld [vmem:[#allocation2 + $0x38] sm:$0xff]  ;;  %v1691_v0 = vmul.f32 %v1920_v59, %v1676_v61  ;;  %v1675_v1 = vld [vmem:[#allocation2] sm:$0xff] }
 0x142   : > { %v1666_v2 = vadd.f32 %v2131_v25, %v1527_v63  ;;  %v1526_v3 = vld [vmem:[#allocation2 + $0x30] sm:$0xff]  ;;  %v1690_v4 = vmul.f32 %v1920_v59, %v1675_v1 }
 0x143   : > { %v1665_v5 = vadd.f32 %v1650_v27, %v1526_v3  ;;  %v1706_v6 = vadd.f32 %v1921_v62, %v1691_v0 }
 0x144   : > { %1674 = vst.msk [vmem:[#allocation2 + $0x38] sm:$0xff] %vm198_vm0, %v1666_v2  ;;  %v1705_v7 = vadd.f32 %v1921_v62, %v1690_v4  ;;  %v1678_v8 = vld [vmem:[#allocation2 + $0x18] sm:$0xff] }
 0x145   : > { %1673 = vst.msk [vmem:[#allocation2 + $0x30] sm:$0xff] %vm198_vm0, %v1665_v5  ;;  %v1714_v9 = vmax.f32 %v1706_v6, 0.0  ;;  %v1693_v10 = vmul.f32 %v1920_v59, %v1678_v8  ;;  %v1677_v11 = vld [vmem:[#allocation2 + $0x10] sm:$0xff] }
 0x146   : > { %v1713_v12 = vmax.f32 %v1705_v7, 0.0  ;;  %v1692_v13 = vmul.f32 %v1920_v59, %v1677_v11 }
 0x147   : > { %v1680_v14 = vld [vmem:[#allocation2 + $0x28] sm:$0xff]  ;;  %1722 = vst.msk [vmem:[%s2516_s23 + $0x8] sm:$0xff] %vm198_vm0, %v1714_v9  ;;  %v1708_v15 = vadd.f32 %v1921_v62, %v1693_v10 }
 0x148   : > { %v1695_v16 = vmul.f32 %v1920_v59, %v1680_v14  ;;  %v1679_v17 = vld [vmem:[#allocation2 + $0x20] sm:$0xff]  ;;  %1721 = vst.msk [vmem:[%s2516_s23] sm:$0xff] %vm198_vm0, %v1713_v12  ;;  %v1707_v18 = vadd.f32 %v1921_v62, %v1692_v13 }
 0x149   : > { %v1694_v19 = vmul.f32 %v1920_v59, %v1679_v17  ;;  %v1716_v20 = vmax.f32 %v1708_v15, 0.0 }
 0x14a   : > { %v1710_v21 = vadd.f32 %v1921_v62, %v1695_v16  ;;  %v1715_v22 = vmax.f32 %v1707_v18, 0.0 }
 0x14b   : > { %v1709_v23 = vadd.f32 %v1921_v62, %v1694_v19  ;;  %v1682_v24 = vld [vmem:[#allocation2 + $0x38] sm:$0xff]  ;;  %1724 = vst.msk [vmem:[%s2516_s23 + $0x18] sm:$0xff] %vm198_vm0, %v1716_v20 }
 0x14c   : > { %v1718_v25 = vmax.f32 %v1710_v21, 0.0  ;;  %v1697_v26 = vmul.f32 %v1920_v59, %v1682_v24  ;;  %v1681_v27 = vld [vmem:[#allocation2 + $0x30] sm:$0xff]  ;;  %1723 = vst.msk [vmem:[%s2516_s23 + $0x10] sm:$0xff] %vm198_vm0, %v1715_v22 }
 0x14d   : > { %v1717_v28 = vmax.f32 %v1709_v23, 0.0  ;;  %v1696_v29 = vmul.f32 %v1920_v59, %v1681_v27 }
 0x14e   : > { %1726 = vst.msk [vmem:[%s2516_s23 + $0x28] sm:$0xff] %vm198_vm0, %v1718_v25  ;;  %v1712_v30 = vadd.f32 %v1921_v62, %v1697_v26 }
 0x14f   : > { %1725 = vst.msk [vmem:[%s2516_s23 + $0x20] sm:$0xff] %vm198_vm0, %v1717_v28  ;;  %v1711_v31 = vadd.f32 %v1921_v62, %v1696_v29 }
 0x150   : > { %v1720_v32 = vmax.f32 %v1712_v30, 0.0 }
 0x151   : > { %v1719_v33 = vmax.f32 %v1711_v31, 0.0 }
 0x152   : > { %1728 = vst.msk [vmem:[%s2516_s23 + $0x38] sm:$0xff] %vm198_vm0, %v1720_v32 }
 0x153   : > { %1727 = vst.msk [vmem:[%s2516_s23 + $0x30] sm:$0xff] %vm198_vm0, %v1719_v33 }
 0x154 PF: > { %s14_s15 = sadd.s32 1, %s2150_s15  }
 0x155   : > { %p11_p4 = scmp.ge.s32.totalorder %s14_s15, 4  }
 0x157   :  { %13 = sbr.rel (!%p11_p4) target bundleno = 1 (0x1), region = 76 }

</bundles_post_ra>
